<compile_context>
chip_gen: v5e
topology: v5e:2x2
jax: 0.10.0
libtpu: 0.0.40
codegen_flags: <defaults>
</compile_context>

<pallas_src>
import functools

import jax
import jax.numpy as jnp
from jax.experimental import pallas as pl
from jax.experimental.pallas import tpu as pltpu

OUT_DIM = 2      # Linear head output width (PyTorch: nn.Linear(hidden, 2))
OUT_PAD = 128    # lane-dense padded head width stored by the kernel


def lstm_model_kernel(x_ref,        # [T, TB, F]   f32  (one batch tile, time-major)
                      gamma_ref,    # [1, F]       f32
                      beta_ref,     # [1, F]       f32
                      w_ih_ref,     # [F, 4H]      bf16, gate cols ordered (i,f,o,g)
                      w_hh_ref,     # [H, 4H]      bf16, gate cols ordered (i,f,o,g)
                      b_ref,        # [1, 4H]      f32,  (b_ih+b_hh), same order
                      w_out_ref,    # [H, OUT_PAD] bf16  (zero-padded past OUT_DIM)
                      b_out_ref,    # [1, OUT_PAD] f32   (zero-padded past OUT_DIM)
                      out_ref,      # [TB, OUT_PAD] f32
                      *scratch):    # optionally (gx_scr,) = VMEM [T, TB, 4H] f32
    T, TB, F = x_ref.shape
    H = w_hh_ref.shape[0]
    use_gx_scratch = len(scratch) == 1

    # ---- LayerNorm over features (eps = 1e-5, PyTorch default), f32 ----
    x = x_ref[...].astype(jnp.float32)                       # [T, TB, F]
    mean = jnp.mean(x, axis=-1, keepdims=True)
    var = jnp.mean((x - mean) ** 2, axis=-1, keepdims=True)
    xn = (x - mean) * jax.lax.rsqrt(var + 1e-5)
    xn = xn * gamma_ref[...] + beta_ref[...]                  # [1,F] broadcasts

    # ---- Hoisted input projection: ONE MXU call for all timesteps, bias folded ----
    xn2 = xn.reshape(T * TB, F).astype(jnp.bfloat16)
    gx = jnp.dot(xn2, w_ih_ref[...],
                 preferred_element_type=jnp.float32) + b_ref[...]   # [T*TB, 4H] f32
    gx = gx.reshape(T, TB, 4 * H)                              # time-major

    w_hh = w_hh_ref[...]                                       # bf16 [H, 4H], loaded once

    # Gate math with host-reordered columns (i, f, o, g): sigmoid only on the first
    # 3H lanes, tanh only on the last H (plus tanh(c_new)) -> half the EUP pushes.
    def gate_math(pre, c):
        sig = jax.nn.sigmoid(pre[:, :3 * H])
        g_g = jnp.tanh(pre[:, 3 * H:])
        i_g = sig[:, 0 * H:1 * H]
        f_g = sig[:, 1 * H:2 * H]
        o_g = sig[:, 2 * H:3 * H]
        c_new = f_g * c + i_g * g_g
        h_new = o_g * jnp.tanh(c_new)
        return h_new, c_new

    h = jnp.zeros((TB, H), jnp.float32)
    c = jnp.zeros((TB, H), jnp.float32)

    if use_gx_scratch:
        # Large-tile path: park the precomputed gates in VMEM, dynamic-index per step.
        gx_scr = scratch[0]
        gx_scr[...] = gx

        def step(t, carry):
            h, c = carry
            pre = gx_scr[t] + jnp.dot(h.astype(jnp.bfloat16), w_hh,
                                      preferred_element_type=jnp.float32)
            return gate_math(pre, c)

        h, c = jax.lax.fori_loop(0, T, step, (h, c), unroll=True)
    else:
        # Small-tile path: gx stays a value; static slices per (fully unrolled) step,
        # no VMEM store/load in the serial recurrence.
        for t in range(T):
            pre = gx[t] + jnp.dot(h.astype(jnp.bfloat16), w_hh,
                                  preferred_element_type=jnp.float32)
            h, c = gate_math(pre, c)

    # ---- Lane-dense Linear head on the last hidden state (padded to 128 lanes) ----
    logits = (jnp.dot(h.astype(jnp.bfloat16), w_out_ref[...],
                      preferred_element_type=jnp.float32)
              + b_out_ref[...])                                # [TB, OUT_PAD]
    out_ref[...] = logits.astype(out_ref.dtype)


def _round_up(v, m):
    return -(-v // m) * m


def _choose_tile_b(B, T, F, H, out_pad, *, max_tile=256, vmem_budget=40 * 1024 * 1024):
    """Pick the batch tile: as large as the VMEM budget / vreg file allow (multiple
    of the 8-row f32 sublane count), but split into >= 2 tiles when the batch is big
    enough so v7x's second TensorCore gets work on the 'parallel' grid axis."""
    per_row = (2 * T * F * 4        # double-buffered x tile (f32)
               + T * 4 * H * 4      # precomputed gates for this tile (value or scratch)
               + 2 * out_pad * 4    # double-buffered output tile
               + 4 * H * 4)         # h/c carries + gate temporaries
    vmem_cap = max(8, (vmem_budget // per_row) // 8 * 8)
    # keep h/c carries + [TB,4H] gate temporaries well under the 256 KiB vreg file
    vreg_cap = max(8, ((128 * 1024) // (6 * H * 4)) // 8 * 8)
    tile = min(max_tile, vmem_cap, vreg_cap)
    b8 = _round_up(B, 8)
    if b8 <= tile:
        tile = _round_up(b8 // 2, 8) if b8 >= 16 else b8
    return tile


def lstm_model_forward(x, params, *, tile_b=None, gx_value_max_bytes=64 * 1024):
    """x: [B, T, F] f32 (batch_first, like PyTorch). Returns [B, 2] f32."""
    B, T, F = x.shape
    H = params["w_hh_t"].shape[0]
    out_pad = params["w_out_t"].shape[1]

    if tile_b is None:
        tile_b = _choose_tile_b(B, T, F, H, out_pad)

    # Pad batch to a multiple of the tile; padded rows are dropped at the end.
    B_pad = _round_up(B, tile_b)
    if B_pad != B:
        x = jnp.pad(x, ((0, B_pad - B), (0, 0), (0, 0)))
    # Host-side layout plumbing: time leading, features on lanes.
    x_t = jnp.transpose(x, (1, 0, 2))                          # [T, B_pad, F]

    # Keep gx in vregs for small tiles; spill to a VMEM scratch for big ones.
    use_gx_scratch = T * tile_b * 4 * H * 4 > gx_value_max_bytes
    scratch_shapes = (
        [pltpu.VMEM((T, tile_b, 4 * H), jnp.float32)] if use_gx_scratch else [])

    grid = (B_pad // tile_b,)
    out = pl.pallas_call(
        lstm_model_kernel,
        out_shape=jax.ShapeDtypeStruct((B_pad, out_pad), jnp.float32),
        grid=grid,
        in_specs=[
            pl.BlockSpec((T, tile_b, F), lambda b: (0, b, 0)),    # x tile per batch block
            pl.BlockSpec((1, F), lambda b: (0, 0)),               # gamma
            pl.BlockSpec((1, F), lambda b: (0, 0)),               # beta
            pl.BlockSpec((F, 4 * H), lambda b: (0, 0)),           # w_ih^T (bf16, i,f,o,g)
            pl.BlockSpec((H, 4 * H), lambda b: (0, 0)),           # w_hh^T (bf16, i,f,o,g)
            pl.BlockSpec((1, 4 * H), lambda b: (0, 0)),           # bias (f32, i,f,o,g)
            pl.BlockSpec((H, out_pad), lambda b: (0, 0)),         # w_out^T padded (bf16)
            pl.BlockSpec((1, out_pad), lambda b: (0, 0)),         # b_out padded (f32)
        ],
        out_specs=pl.BlockSpec((tile_b, out_pad), lambda b: (b, 0)),
        scratch_shapes=scratch_shapes,
        compiler_params=pltpu.CompilerParams(
            # Batch axis is independent -> megacore-shardable on v7x.
            dimension_semantics=("parallel",),
            # <= 48 MiB so the same tiling also fits under v7x's 64 MiB VMEM.
            vmem_limit_bytes=48 * 1024 * 1024,
        ),
    )(x_t,
      params["gamma"], params["beta"],
      params["w_ih_t"], params["w_hh_t"], params["b_g"],
      params["w_out_t"], params["b_out_pad"])
    return out[:B, :OUT_DIM]


def make_params(key, num_features, hidden_size):
    F, H = num_features, hidden_size
    ks = jax.random.split(key, 6)
    scale = 1.0 / jnp.sqrt(H)
    # PyTorch layout / gate order (i, f, g, o) along rows of the [4H, *] matrices.
    w_ih = jax.random.uniform(ks[0], (4 * H, F), jnp.float32, -scale, scale)
    w_hh = jax.random.uniform(ks[1], (4 * H, H), jnp.float32, -scale, scale)
    # b = b_ih + b_hh (PyTorch keeps them separate; the sum is equivalent).
    b = (jax.random.uniform(ks[2], (1, 4 * H), jnp.float32, -scale, scale)
         + jax.random.uniform(ks[3], (1, 4 * H), jnp.float32, -scale, scale))
    w_out = jax.random.uniform(ks[4], (OUT_DIM, H), jnp.float32, -scale, scale)
    b_out = jax.random.uniform(ks[5], (1, OUT_DIM), jnp.float32, -scale, scale)

    # Kernel-side gate ordering: (i, f, o, g) so sigmoid/tanh can be split by lanes.
    perm = jnp.concatenate([jnp.arange(0, H), jnp.arange(H, 2 * H),
                            jnp.arange(3 * H, 4 * H), jnp.arange(2 * H, 3 * H)])
    w_ih_k = w_ih[perm]                      # [4H, F] rows (i,f,o,g)
    w_hh_k = w_hh[perm]                      # [4H, H]
    b_k = b[:, perm]                         # [1, 4H]

    # Lane-dense padded head operands.
    w_out_pad = jnp.zeros((H, OUT_PAD), jnp.float32).at[:, :OUT_DIM].set(w_out.T)
    b_out_pad = jnp.zeros((1, OUT_PAD), jnp.float32).at[:, :OUT_DIM].set(b_out)

    return {
        "gamma": jnp.ones((1, F), jnp.float32),
        "beta": jnp.zeros((1, F), jnp.float32),
        # Kernel operands: pre-transposed, gate-reordered, bf16 for the MXU.
        "w_ih_t": w_ih_k.T.astype(jnp.bfloat16),    # [F, 4H]
        "w_hh_t": w_hh_k.T.astype(jnp.bfloat16),    # [H, 4H]
        "b_g": b_k,                                  # [1, 4H] f32
        "w_out_t": w_out_pad.astype(jnp.bfloat16),   # [H, OUT_PAD]
        "b_out_pad": b_out_pad,                      # [1, OUT_PAD] f32
        # f32 originals (PyTorch gate order) for the pure-JAX reference.
        "w_ih": w_ih, "w_hh": w_hh, "b": b, "w_out": w_out, "b_out": b_out,
    }


def reference_forward(x, p, *, bf16_matmul=True):
    """Pure-JAX reference (PyTorch semantics, gate order i,f,g,o). bf16_matmul
    matches the kernel's MXU operand precision; False = full-f32 sanity check."""
    B, T, F = x.shape
    H = p["w_hh"].shape[1]

    def mm(a, w_t):
        if bf16_matmul:
            a = a.astype(jnp.bfloat16)
            w_t = w_t.astype(jnp.bfloat16)
        return jnp.dot(a, w_t, preferred_element_type=jnp.float32)

    mean = jnp.mean(x, axis=-1, keepdims=True)
    var = jnp.mean((x - mean) ** 2, axis=-1, keepdims=True)
    xn = (x - mean) * jax.lax.rsqrt(var + 1e-5) * p["gamma"] + p["beta"]

    w_ih_t, w_hh_t, w_out_t = p["w_ih"].T, p["w_hh"].T, p["w_out"].T
    h = jnp.zeros((B, H), jnp.float32)
    c = jnp.zeros((B, H), jnp.float32)
    for t in range(T):
        g = mm(xn[:, t, :], w_ih_t) + mm(h, w_hh_t) + p["b"]
        i_g = jax.nn.sigmoid(g[:, :H])
        f_g = jax.nn.sigmoid(g[:, H:2 * H])
        g_g = jnp.tanh(g[:, 2 * H:3 * H])
        o_g = jax.nn.sigmoid(g[:, 3 * H:])
        c = f_g * c + i_g * g_g
        h = o_g * jnp.tanh(c)
    return mm(h, w_out_t) + p["b_out"]


if __name__ == "__main__":
    B, T, F, H = 2, 8, 16, 32
    key = jax.random.PRNGKey(0)
    k_x, k_p = jax.random.split(key)
    x = jax.random.normal(k_x, (B, T, F), jnp.float32)
    params = make_params(k_p, F, H)

    out = lstm_model_forward(x, params)
    out = jax.block_until_ready(out)
    assert out.shape == (B, OUT_DIM)

    # Tight check against a reference using the same bf16 MXU operand precision.
    ref_bf16 = reference_forward(x, params, bf16_matmul=True)
    assert jnp.allclose(out, ref_bf16, atol=5e-3, rtol=5e-3), (out, ref_bf16)

    # Loose check against the full-f32 reference (guards overall semantics).
    ref_f32 = reference_forward(x, params, bf16_matmul=False)
    assert jnp.allclose(out, ref_f32, atol=3e-2, rtol=3e-2), (out, ref_f32)

    print("KERNEL_OK")
</pallas_src>

<mosaic_0001>
module attributes {stable_mosaic.version = 11 : i64} {
  func.func @lstm_model_kernel(%arg0: i32, %arg1: memref<8x8x16xf32, #tpu.memory_space<vmem>>, %arg2: memref<1x16xf32, #tpu.memory_space<vmem>>, %arg3: memref<1x16xf32, #tpu.memory_space<vmem>>, %arg4: memref<16x128xbf16, #tpu.memory_space<vmem>>, %arg5: memref<32x128xbf16, #tpu.memory_space<vmem>>, %arg6: memref<1x128xf32, #tpu.memory_space<vmem>>, %arg7: memref<32x128xbf16, #tpu.memory_space<vmem>>, %arg8: memref<1x128xf32, #tpu.memory_space<vmem>>, %arg9: memref<8x128xf32, #tpu.memory_space<vmem>>) attributes {dimension_semantics = [#tpu.dimension_semantics<parallel>], iteration_bounds = array<i64: 1>, scalar_prefetch = 0 : i64, scratch_operands = 0 : i64, tpu.core_type = #tpu.core_type<tc>, window_params = [{transform_indices = @transform_0, window_bounds = array<i64: 8, 8, 16>}, {pipeline_mode = #tpu.pipeline_mode<synchronous>, transform_indices = @transform_1, window_bounds = array<i64: 1, 16>}, {pipeline_mode = #tpu.pipeline_mode<synchronous>, transform_indices = @transform_2, window_bounds = array<i64: 1, 16>}, {pipeline_mode = #tpu.pipeline_mode<synchronous>, transform_indices = @transform_3, window_bounds = array<i64: 16, 128>}, {pipeline_mode = #tpu.pipeline_mode<synchronous>, transform_indices = @transform_4, window_bounds = array<i64: 32, 128>}, {pipeline_mode = #tpu.pipeline_mode<synchronous>, transform_indices = @transform_5, window_bounds = array<i64: 1, 128>}, {pipeline_mode = #tpu.pipeline_mode<synchronous>, transform_indices = @transform_6, window_bounds = array<i64: 32, 128>}, {pipeline_mode = #tpu.pipeline_mode<synchronous>, transform_indices = @transform_7, window_bounds = array<i64: 1, 128>}, {transform_indices = @transform_8, window_bounds = array<i64: 8, 128>}]} {
    %c0 = arith.constant 0 : index
    %c0_0 = arith.constant 0 : index
    %c0_1 = arith.constant 0 : index
    %0 = vector.load %arg1[%c0, %c0_0, %c0_1] : memref<8x8x16xf32, #tpu.memory_space<vmem>>, vector<8x8x16xf32>
    %cst = arith.constant dense<0.000000e+00> : vector<8x8xf32>
    %1 = vector.multi_reduction <add>, %0, %cst [2] : vector<8x8x16xf32> to vector<8x8xf32>
    %2 = vector.shape_cast %1 : vector<8x8xf32> to vector<8x8x1xf32>
    %cst_2 = arith.constant 1.600000e+01 : f32
    %3 = vector.broadcast %cst_2 : f32 to vector<8x8x1xf32>
    %4 = arith.divf %2, %3 : vector<8x8x1xf32>
    %5 = vector.broadcast %4 : vector<8x8x1xf32> to vector<8x8x16xf32>
    %6 = arith.subf %0, %5 : vector<8x8x16xf32>
    %7 = arith.mulf %6, %6 : vector<8x8x16xf32>
    %cst_3 = arith.constant dense<0.000000e+00> : vector<8x8xf32>
    %8 = vector.multi_reduction <add>, %7, %cst_3 [2] : vector<8x8x16xf32> to vector<8x8xf32>
    %9 = vector.shape_cast %8 : vector<8x8xf32> to vector<8x8x1xf32>
    %cst_4 = arith.constant 1.600000e+01 : f32
    %10 = vector.broadcast %cst_4 : f32 to vector<8x8x1xf32>
    %11 = arith.divf %9, %10 : vector<8x8x1xf32>
    %12 = vector.broadcast %4 : vector<8x8x1xf32> to vector<8x8x16xf32>
    %13 = arith.subf %0, %12 : vector<8x8x16xf32>
    %cst_5 = arith.constant 9.99999974E-6 : f32
    %14 = vector.broadcast %cst_5 : f32 to vector<8x8x1xf32>
    %15 = arith.addf %11, %14 : vector<8x8x1xf32>
    %16 = math.rsqrt %15 : vector<8x8x1xf32>
    %17 = vector.broadcast %16 : vector<8x8x1xf32> to vector<8x8x16xf32>
    %18 = arith.mulf %13, %17 : vector<8x8x16xf32>
    %c0_6 = arith.constant 0 : index
    %c0_7 = arith.constant 0 : index
    %19 = vector.load %arg2[%c0_6, %c0_7] : memref<1x16xf32, #tpu.memory_space<vmem>>, vector<1x16xf32>
    %20 = vector.shape_cast %19 : vector<1x16xf32> to vector<1x1x16xf32>
    %21 = vector.broadcast %20 : vector<1x1x16xf32> to vector<8x8x16xf32>
    %22 = arith.mulf %18, %21 : vector<8x8x16xf32>
    %c0_8 = arith.constant 0 : index
    %c0_9 = arith.constant 0 : index
    %23 = vector.load %arg3[%c0_8, %c0_9] : memref<1x16xf32, #tpu.memory_space<vmem>>, vector<1x16xf32>
    %24 = vector.shape_cast %23 : vector<1x16xf32> to vector<1x1x16xf32>
    %25 = vector.broadcast %24 : vector<1x1x16xf32> to vector<8x8x16xf32>
    %26 = arith.addf %22, %25 : vector<8x8x16xf32>
    %27 = vector.shape_cast %26 : vector<8x8x16xf32> to vector<64x16xf32>
    %28 = arith.truncf %27 : vector<64x16xf32> to vector<64x16xbf16>
    %c0_10 = arith.constant 0 : index
    %c0_11 = arith.constant 0 : index
    %29 = vector.load %arg4[%c0_10, %c0_11] : memref<16x128xbf16, #tpu.memory_space<vmem>>, vector<16x128xbf16>
    %cst_12 = arith.constant dense<0.000000e+00> : vector<64x128xf32>
    %30 = tpu.matmul %28, %29, %cst_12 {dimension_numbers = #tpu.dot_dimension_numbers<[1], [0], [0], [1], [0, 0, 1, 1], [], []>} : vector<64x16xbf16>, vector<16x128xbf16>, vector<64x128xf32> -> vector<64x128xf32>
    %c0_13 = arith.constant 0 : index
    %c0_14 = arith.constant 0 : index
    %31 = vector.load %arg6[%c0_13, %c0_14] : memref<1x128xf32, #tpu.memory_space<vmem>>, vector<1x128xf32>
    %32 = vector.broadcast %31 : vector<1x128xf32> to vector<64x128xf32>
    %33 = arith.addf %30, %32 : vector<64x128xf32>
    %34 = vector.shape_cast %33 : vector<64x128xf32> to vector<8x8x128xf32>
    %c0_15 = arith.constant 0 : index
    %c0_16 = arith.constant 0 : index
    %35 = vector.load %arg5[%c0_15, %c0_16] : memref<32x128xbf16, #tpu.memory_space<vmem>>, vector<32x128xbf16>
    %cst_17 = arith.constant 0.000000e+00 : f32
    %36 = vector.broadcast %cst_17 : f32 to vector<8x32xf32>
    %cst_18 = arith.constant 0.000000e+00 : f32
    %37 = vector.broadcast %cst_18 : f32 to vector<8x32xf32>
    %38 = vector.extract_strided_slice %34 {offsets = [0, 0, 0], sizes = [1, 8, 128], strides = [1, 1, 1]} : vector<8x8x128xf32> to vector<1x8x128xf32>
    %39 = vector.shape_cast %38 : vector<1x8x128xf32> to vector<8x128xf32>
    %40 = arith.truncf %36 : vector<8x32xf32> to vector<8x32xbf16>
    %cst_19 = arith.constant dense<0.000000e+00> : vector<8x128xf32>
    %41 = tpu.matmul %40, %35, %cst_19 {dimension_numbers = #tpu.dot_dimension_numbers<[1], [0], [0], [1], [0, 0, 1, 1], [], []>} : vector<8x32xbf16>, vector<32x128xbf16>, vector<8x128xf32> -> vector<8x128xf32>
    %42 = arith.addf %39, %41 : vector<8x128xf32>
    %43 = vector.extract_strided_slice %42 {offsets = [0, 0], sizes = [8, 96], strides = [1, 1]} : vector<8x128xf32> to vector<8x96xf32>
    %44 = arith.negf %43 : vector<8x96xf32>
    %45 = math.exp %44 : vector<8x96xf32>
    %cst_20 = arith.constant 1.000000e+00 : f32
    %46 = vector.broadcast %cst_20 : f32 to vector<8x96xf32>
    %47 = arith.addf %46, %45 : vector<8x96xf32>
    %48 = arith.divf %46, %47 : vector<8x96xf32>
    %49 = vector.extract_strided_slice %42 {offsets = [0, 96], sizes = [8, 32], strides = [1, 1]} : vector<8x128xf32> to vector<8x32xf32>
    %50 = math.tanh %49 : vector<8x32xf32>
    %51 = vector.extract_strided_slice %48 {offsets = [0, 0], sizes = [8, 32], strides = [1, 1]} : vector<8x96xf32> to vector<8x32xf32>
    %52 = vector.extract_strided_slice %48 {offsets = [0, 32], sizes = [8, 32], strides = [1, 1]} : vector<8x96xf32> to vector<8x32xf32>
    %53 = vector.extract_strided_slice %48 {offsets = [0, 64], sizes = [8, 32], strides = [1, 1]} : vector<8x96xf32> to vector<8x32xf32>
    %54 = arith.mulf %52, %37 : vector<8x32xf32>
    %55 = arith.mulf %51, %50 : vector<8x32xf32>
    %56 = arith.addf %54, %55 : vector<8x32xf32>
    %57 = math.tanh %56 : vector<8x32xf32>
    %58 = arith.mulf %53, %57 : vector<8x32xf32>
    %59 = vector.extract_strided_slice %34 {offsets = [1, 0, 0], sizes = [1, 8, 128], strides = [1, 1, 1]} : vector<8x8x128xf32> to vector<1x8x128xf32>
    %60 = vector.shape_cast %59 : vector<1x8x128xf32> to vector<8x128xf32>
    %61 = arith.truncf %58 : vector<8x32xf32> to vector<8x32xbf16>
    %cst_21 = arith.constant dense<0.000000e+00> : vector<8x128xf32>
    %62 = tpu.matmul %61, %35, %cst_21 {dimension_numbers = #tpu.dot_dimension_numbers<[1], [0], [0], [1], [0, 0, 1, 1], [], []>} : vector<8x32xbf16>, vector<32x128xbf16>, vector<8x128xf32> -> vector<8x128xf32>
    %63 = arith.addf %60, %62 : vector<8x128xf32>
    %64 = vector.extract_strided_slice %63 {offsets = [0, 0], sizes = [8, 96], strides = [1, 1]} : vector<8x128xf32> to vector<8x96xf32>
    %65 = arith.negf %64 : vector<8x96xf32>
    %66 = math.exp %65 : vector<8x96xf32>
    %cst_22 = arith.constant 1.000000e+00 : f32
    %67 = vector.broadcast %cst_22 : f32 to vector<8x96xf32>
    %68 = arith.addf %67, %66 : vector<8x96xf32>
    %69 = arith.divf %67, %68 : vector<8x96xf32>
    %70 = vector.extract_strided_slice %63 {offsets = [0, 96], sizes = [8, 32], strides = [1, 1]} : vector<8x128xf32> to vector<8x32xf32>
    %71 = math.tanh %70 : vector<8x32xf32>
    %72 = vector.extract_strided_slice %69 {offsets = [0, 0], sizes = [8, 32], strides = [1, 1]} : vector<8x96xf32> to vector<8x32xf32>
    %73 = vector.extract_strided_slice %69 {offsets = [0, 32], sizes = [8, 32], strides = [1, 1]} : vector<8x96xf32> to vector<8x32xf32>
    %74 = vector.extract_strided_slice %69 {offsets = [0, 64], sizes = [8, 32], strides = [1, 1]} : vector<8x96xf32> to vector<8x32xf32>
    %75 = arith.mulf %73, %56 : vector<8x32xf32>
    %76 = arith.mulf %72, %71 : vector<8x32xf32>
    %77 = arith.addf %75, %76 : vector<8x32xf32>
    %78 = math.tanh %77 : vector<8x32xf32>
    %79 = arith.mulf %74, %78 : vector<8x32xf32>
    %80 = vector.extract_strided_slice %34 {offsets = [2, 0, 0], sizes = [1, 8, 128], strides = [1, 1, 1]} : vector<8x8x128xf32> to vector<1x8x128xf32>
    %81 = vector.shape_cast %80 : vector<1x8x128xf32> to vector<8x128xf32>
    %82 = arith.truncf %79 : vector<8x32xf32> to vector<8x32xbf16>
    %cst_23 = arith.constant dense<0.000000e+00> : vector<8x128xf32>
    %83 = tpu.matmul %82, %35, %cst_23 {dimension_numbers = #tpu.dot_dimension_numbers<[1], [0], [0], [1], [0, 0, 1, 1], [], []>} : vector<8x32xbf16>, vector<32x128xbf16>, vector<8x128xf32> -> vector<8x128xf32>
    %84 = arith.addf %81, %83 : vector<8x128xf32>
    %85 = vector.extract_strided_slice %84 {offsets = [0, 0], sizes = [8, 96], strides = [1, 1]} : vector<8x128xf32> to vector<8x96xf32>
    %86 = arith.negf %85 : vector<8x96xf32>
    %87 = math.exp %86 : vector<8x96xf32>
    %cst_24 = arith.constant 1.000000e+00 : f32
    %88 = vector.broadcast %cst_24 : f32 to vector<8x96xf32>
    %89 = arith.addf %88, %87 : vector<8x96xf32>
    %90 = arith.divf %88, %89 : vector<8x96xf32>
    %91 = vector.extract_strided_slice %84 {offsets = [0, 96], sizes = [8, 32], strides = [1, 1]} : vector<8x128xf32> to vector<8x32xf32>
    %92 = math.tanh %91 : vector<8x32xf32>
    %93 = vector.extract_strided_slice %90 {offsets = [0, 0], sizes = [8, 32], strides = [1, 1]} : vector<8x96xf32> to vector<8x32xf32>
    %94 = vector.extract_strided_slice %90 {offsets = [0, 32], sizes = [8, 32], strides = [1, 1]} : vector<8x96xf32> to vector<8x32xf32>
    %95 = vector.extract_strided_slice %90 {offsets = [0, 64], sizes = [8, 32], strides = [1, 1]} : vector<8x96xf32> to vector<8x32xf32>
    %96 = arith.mulf %94, %77 : vector<8x32xf32>
    %97 = arith.mulf %93, %92 : vector<8x32xf32>
    %98 = arith.addf %96, %97 : vector<8x32xf32>
    %99 = math.tanh %98 : vector<8x32xf32>
    %100 = arith.mulf %95, %99 : vector<8x32xf32>
    %101 = vector.extract_strided_slice %34 {offsets = [3, 0, 0], sizes = [1, 8, 128], strides = [1, 1, 1]} : vector<8x8x128xf32> to vector<1x8x128xf32>
    %102 = vector.shape_cast %101 : vector<1x8x128xf32> to vector<8x128xf32>
    %103 = arith.truncf %100 : vector<8x32xf32> to vector<8x32xbf16>
    %cst_25 = arith.constant dense<0.000000e+00> : vector<8x128xf32>
    %104 = tpu.matmul %103, %35, %cst_25 {dimension_numbers = #tpu.dot_dimension_numbers<[1], [0], [0], [1], [0, 0, 1, 1], [], []>} : vector<8x32xbf16>, vector<32x128xbf16>, vector<8x128xf32> -> vector<8x128xf32>
    %105 = arith.addf %102, %104 : vector<8x128xf32>
    %106 = vector.extract_strided_slice %105 {offsets = [0, 0], sizes = [8, 96], strides = [1, 1]} : vector<8x128xf32> to vector<8x96xf32>
    %107 = arith.negf %106 : vector<8x96xf32>
    %108 = math.exp %107 : vector<8x96xf32>
    %cst_26 = arith.constant 1.000000e+00 : f32
    %109 = vector.broadcast %cst_26 : f32 to vector<8x96xf32>
    %110 = arith.addf %109, %108 : vector<8x96xf32>
    %111 = arith.divf %109, %110 : vector<8x96xf32>
    %112 = vector.extract_strided_slice %105 {offsets = [0, 96], sizes = [8, 32], strides = [1, 1]} : vector<8x128xf32> to vector<8x32xf32>
    %113 = math.tanh %112 : vector<8x32xf32>
    %114 = vector.extract_strided_slice %111 {offsets = [0, 0], sizes = [8, 32], strides = [1, 1]} : vector<8x96xf32> to vector<8x32xf32>
    %115 = vector.extract_strided_slice %111 {offsets = [0, 32], sizes = [8, 32], strides = [1, 1]} : vector<8x96xf32> to vector<8x32xf32>
    %116 = vector.extract_strided_slice %111 {offsets = [0, 64], sizes = [8, 32], strides = [1, 1]} : vector<8x96xf32> to vector<8x32xf32>
    %117 = arith.mulf %115, %98 : vector<8x32xf32>
    %118 = arith.mulf %114, %113 : vector<8x32xf32>
    %119 = arith.addf %117, %118 : vector<8x32xf32>
    %120 = math.tanh %119 : vector<8x32xf32>
    %121 = arith.mulf %116, %120 : vector<8x32xf32>
    %122 = vector.extract_strided_slice %34 {offsets = [4, 0, 0], sizes = [1, 8, 128], strides = [1, 1, 1]} : vector<8x8x128xf32> to vector<1x8x128xf32>
    %123 = vector.shape_cast %122 : vector<1x8x128xf32> to vector<8x128xf32>
    %124 = arith.truncf %121 : vector<8x32xf32> to vector<8x32xbf16>
    %cst_27 = arith.constant dense<0.000000e+00> : vector<8x128xf32>
    %125 = tpu.matmul %124, %35, %cst_27 {dimension_numbers = #tpu.dot_dimension_numbers<[1], [0], [0], [1], [0, 0, 1, 1], [], []>} : vector<8x32xbf16>, vector<32x128xbf16>, vector<8x128xf32> -> vector<8x128xf32>
    %126 = arith.addf %123, %125 : vector<8x128xf32>
    %127 = vector.extract_strided_slice %126 {offsets = [0, 0], sizes = [8, 96], strides = [1, 1]} : vector<8x128xf32> to vector<8x96xf32>
    %128 = arith.negf %127 : vector<8x96xf32>
    %129 = math.exp %128 : vector<8x96xf32>
    %cst_28 = arith.constant 1.000000e+00 : f32
    %130 = vector.broadcast %cst_28 : f32 to vector<8x96xf32>
    %131 = arith.addf %130, %129 : vector<8x96xf32>
    %132 = arith.divf %130, %131 : vector<8x96xf32>
    %133 = vector.extract_strided_slice %126 {offsets = [0, 96], sizes = [8, 32], strides = [1, 1]} : vector<8x128xf32> to vector<8x32xf32>
    %134 = math.tanh %133 : vector<8x32xf32>
    %135 = vector.extract_strided_slice %132 {offsets = [0, 0], sizes = [8, 32], strides = [1, 1]} : vector<8x96xf32> to vector<8x32xf32>
    %136 = vector.extract_strided_slice %132 {offsets = [0, 32], sizes = [8, 32], strides = [1, 1]} : vector<8x96xf32> to vector<8x32xf32>
    %137 = vector.extract_strided_slice %132 {offsets = [0, 64], sizes = [8, 32], strides = [1, 1]} : vector<8x96xf32> to vector<8x32xf32>
    %138 = arith.mulf %136, %119 : vector<8x32xf32>
    %139 = arith.mulf %135, %134 : vector<8x32xf32>
    %140 = arith.addf %138, %139 : vector<8x32xf32>
    %141 = math.tanh %140 : vector<8x32xf32>
    %142 = arith.mulf %137, %141 : vector<8x32xf32>
    %143 = vector.extract_strided_slice %34 {offsets = [5, 0, 0], sizes = [1, 8, 128], strides = [1, 1, 1]} : vector<8x8x128xf32> to vector<1x8x128xf32>
    %144 = vector.shape_cast %143 : vector<1x8x128xf32> to vector<8x128xf32>
    %145 = arith.truncf %142 : vector<8x32xf32> to vector<8x32xbf16>
    %cst_29 = arith.constant dense<0.000000e+00> : vector<8x128xf32>
    %146 = tpu.matmul %145, %35, %cst_29 {dimension_numbers = #tpu.dot_dimension_numbers<[1], [0], [0], [1], [0, 0, 1, 1], [], []>} : vector<8x32xbf16>, vector<32x128xbf16>, vector<8x128xf32> -> vector<8x128xf32>
    %147 = arith.addf %144, %146 : vector<8x128xf32>
    %148 = vector.extract_strided_slice %147 {offsets = [0, 0], sizes = [8, 96], strides = [1, 1]} : vector<8x128xf32> to vector<8x96xf32>
    %149 = arith.negf %148 : vector<8x96xf32>
    %150 = math.exp %149 : vector<8x96xf32>
    %cst_30 = arith.constant 1.000000e+00 : f32
    %151 = vector.broadcast %cst_30 : f32 to vector<8x96xf32>
    %152 = arith.addf %151, %150 : vector<8x96xf32>
    %153 = arith.divf %151, %152 : vector<8x96xf32>
    %154 = vector.extract_strided_slice %147 {offsets = [0, 96], sizes = [8, 32], strides = [1, 1]} : vector<8x128xf32> to vector<8x32xf32>
    %155 = math.tanh %154 : vector<8x32xf32>
    %156 = vector.extract_strided_slice %153 {offsets = [0, 0], sizes = [8, 32], strides = [1, 1]} : vector<8x96xf32> to vector<8x32xf32>
    %157 = vector.extract_strided_slice %153 {offsets = [0, 32], sizes = [8, 32], strides = [1, 1]} : vector<8x96xf32> to vector<8x32xf32>
    %158 = vector.extract_strided_slice %153 {offsets = [0, 64], sizes = [8, 32], strides = [1, 1]} : vector<8x96xf32> to vector<8x32xf32>
    %159 = arith.mulf %157, %140 : vector<8x32xf32>
    %160 = arith.mulf %156, %155 : vector<8x32xf32>
    %161 = arith.addf %159, %160 : vector<8x32xf32>
    %162 = math.tanh %161 : vector<8x32xf32>
    %163 = arith.mulf %158, %162 : vector<8x32xf32>
    %164 = vector.extract_strided_slice %34 {offsets = [6, 0, 0], sizes = [1, 8, 128], strides = [1, 1, 1]} : vector<8x8x128xf32> to vector<1x8x128xf32>
    %165 = vector.shape_cast %164 : vector<1x8x128xf32> to vector<8x128xf32>
    %166 = arith.truncf %163 : vector<8x32xf32> to vector<8x32xbf16>
    %cst_31 = arith.constant dense<0.000000e+00> : vector<8x128xf32>
    %167 = tpu.matmul %166, %35, %cst_31 {dimension_numbers = #tpu.dot_dimension_numbers<[1], [0], [0], [1], [0, 0, 1, 1], [], []>} : vector<8x32xbf16>, vector<32x128xbf16>, vector<8x128xf32> -> vector<8x128xf32>
    %168 = arith.addf %165, %167 : vector<8x128xf32>
    %169 = vector.extract_strided_slice %168 {offsets = [0, 0], sizes = [8, 96], strides = [1, 1]} : vector<8x128xf32> to vector<8x96xf32>
    %170 = arith.negf %169 : vector<8x96xf32>
    %171 = math.exp %170 : vector<8x96xf32>
    %cst_32 = arith.constant 1.000000e+00 : f32
    %172 = vector.broadcast %cst_32 : f32 to vector<8x96xf32>
    %173 = arith.addf %172, %171 : vector<8x96xf32>
    %174 = arith.divf %172, %173 : vector<8x96xf32>
    %175 = vector.extract_strided_slice %168 {offsets = [0, 96], sizes = [8, 32], strides = [1, 1]} : vector<8x128xf32> to vector<8x32xf32>
    %176 = math.tanh %175 : vector<8x32xf32>
    %177 = vector.extract_strided_slice %174 {offsets = [0, 0], sizes = [8, 32], strides = [1, 1]} : vector<8x96xf32> to vector<8x32xf32>
    %178 = vector.extract_strided_slice %174 {offsets = [0, 32], sizes = [8, 32], strides = [1, 1]} : vector<8x96xf32> to vector<8x32xf32>
    %179 = vector.extract_strided_slice %174 {offsets = [0, 64], sizes = [8, 32], strides = [1, 1]} : vector<8x96xf32> to vector<8x32xf32>
    %180 = arith.mulf %178, %161 : vector<8x32xf32>
    %181 = arith.mulf %177, %176 : vector<8x32xf32>
    %182 = arith.addf %180, %181 : vector<8x32xf32>
    %183 = math.tanh %182 : vector<8x32xf32>
    %184 = arith.mulf %179, %183 : vector<8x32xf32>
    %185 = vector.extract_strided_slice %34 {offsets = [7, 0, 0], sizes = [1, 8, 128], strides = [1, 1, 1]} : vector<8x8x128xf32> to vector<1x8x128xf32>
    %186 = vector.shape_cast %185 : vector<1x8x128xf32> to vector<8x128xf32>
    %187 = arith.truncf %184 : vector<8x32xf32> to vector<8x32xbf16>
    %cst_33 = arith.constant dense<0.000000e+00> : vector<8x128xf32>
    %188 = tpu.matmul %187, %35, %cst_33 {dimension_numbers = #tpu.dot_dimension_numbers<[1], [0], [0], [1], [0, 0, 1, 1], [], []>} : vector<8x32xbf16>, vector<32x128xbf16>, vector<8x128xf32> -> vector<8x128xf32>
    %189 = arith.addf %186, %188 : vector<8x128xf32>
    %190 = vector.extract_strided_slice %189 {offsets = [0, 0], sizes = [8, 96], strides = [1, 1]} : vector<8x128xf32> to vector<8x96xf32>
    %191 = arith.negf %190 : vector<8x96xf32>
    %192 = math.exp %191 : vector<8x96xf32>
    %cst_34 = arith.constant 1.000000e+00 : f32
    %193 = vector.broadcast %cst_34 : f32 to vector<8x96xf32>
    %194 = arith.addf %193, %192 : vector<8x96xf32>
    %195 = arith.divf %193, %194 : vector<8x96xf32>
    %196 = vector.extract_strided_slice %189 {offsets = [0, 96], sizes = [8, 32], strides = [1, 1]} : vector<8x128xf32> to vector<8x32xf32>
    %197 = math.tanh %196 : vector<8x32xf32>
    %198 = vector.extract_strided_slice %195 {offsets = [0, 0], sizes = [8, 32], strides = [1, 1]} : vector<8x96xf32> to vector<8x32xf32>
    %199 = vector.extract_strided_slice %195 {offsets = [0, 32], sizes = [8, 32], strides = [1, 1]} : vector<8x96xf32> to vector<8x32xf32>
    %200 = vector.extract_strided_slice %195 {offsets = [0, 64], sizes = [8, 32], strides = [1, 1]} : vector<8x96xf32> to vector<8x32xf32>
    %201 = arith.mulf %199, %182 : vector<8x32xf32>
    %202 = arith.mulf %198, %197 : vector<8x32xf32>
    %203 = arith.addf %201, %202 : vector<8x32xf32>
    %204 = math.tanh %203 : vector<8x32xf32>
    %205 = arith.mulf %200, %204 : vector<8x32xf32>
    %206 = arith.truncf %205 : vector<8x32xf32> to vector<8x32xbf16>
    %c0_35 = arith.constant 0 : index
    %c0_36 = arith.constant 0 : index
    %207 = vector.load %arg7[%c0_35, %c0_36] : memref<32x128xbf16, #tpu.memory_space<vmem>>, vector<32x128xbf16>
    %cst_37 = arith.constant dense<0.000000e+00> : vector<8x128xf32>
    %208 = tpu.matmul %206, %207, %cst_37 {dimension_numbers = #tpu.dot_dimension_numbers<[1], [0], [0], [1], [0, 0, 1, 1], [], []>} : vector<8x32xbf16>, vector<32x128xbf16>, vector<8x128xf32> -> vector<8x128xf32>
    %c0_38 = arith.constant 0 : index
    %c0_39 = arith.constant 0 : index
    %209 = vector.load %arg8[%c0_38, %c0_39] : memref<1x128xf32, #tpu.memory_space<vmem>>, vector<1x128xf32>
    %210 = vector.broadcast %209 : vector<1x128xf32> to vector<8x128xf32>
    %211 = arith.addf %208, %210 : vector<8x128xf32>
    %c0_40 = arith.constant 0 : index
    %c0_41 = arith.constant 0 : index
    %212 = vector.load %arg9[%c0_40, %c0_41] : memref<8x128xf32, #tpu.memory_space<vmem>>, vector<8x128xf32>
    tpu.vector_store %arg9[%c0_40, %c0_41], %211 {strides = array<i32>} : memref<8x128xf32, #tpu.memory_space<vmem>>, vector<8x128xf32>,
    return
  }
  func.func @transform_0(%arg0: i32) -> (i32, i32, i32) {
    %c0_i32 = arith.constant 0 : i32
    %c0_i32_0 = arith.constant 0 : i32
    %c0_i32_1 = arith.constant 0 : i32
    return %c0_i32, %arg0, %c0_i32_0 : i32, i32, i32
  }
  func.func @transform_1(%arg0: i32) -> (i32, i32) {
    %c0_i32 = arith.constant 0 : i32
    %c0_i32_0 = arith.constant 0 : i32
    %c0_i32_1 = arith.constant 0 : i32
    return %c0_i32, %c0_i32_0 : i32, i32
  }
  func.func @transform_2(%arg0: i32) -> (i32, i32) {
    %c0_i32 = arith.constant 0 : i32
    %c0_i32_0 = arith.constant 0 : i32
    %c0_i32_1 = arith.constant 0 : i32
    return %c0_i32, %c0_i32_0 : i32, i32
  }
  func.func @transform_3(%arg0: i32) -> (i32, i32) {
    %c0_i32 = arith.constant 0 : i32
    %c0_i32_0 = arith.constant 0 : i32
    %c0_i32_1 = arith.constant 0 : i32
    return %c0_i32, %c0_i32_0 : i32, i32
  }
  func.func @transform_4(%arg0: i32) -> (i32, i32) {
    %c0_i32 = arith.constant 0 : i32
    %c0_i32_0 = arith.constant 0 : i32
    %c0_i32_1 = arith.constant 0 : i32
    return %c0_i32, %c0_i32_0 : i32, i32
  }
  func.func @transform_5(%arg0: i32) -> (i32, i32) {
    %c0_i32 = arith.constant 0 : i32
    %c0_i32_0 = arith.constant 0 : i32
    %c0_i32_1 = arith.constant 0 : i32
    return %c0_i32, %c0_i32_0 : i32, i32
  }
  func.func @transform_6(%arg0: i32) -> (i32, i32) {
    %c0_i32 = arith.constant 0 : i32
    %c0_i32_0 = arith.constant 0 : i32
    %c0_i32_1 = arith.constant 0 : i32
    return %c0_i32, %c0_i32_0 : i32, i32
  }
  func.func @transform_7(%arg0: i32) -> (i32, i32) {
    %c0_i32 = arith.constant 0 : i32
    %c0_i32_0 = arith.constant 0 : i32
    %c0_i32_1 = arith.constant 0 : i32
    return %c0_i32, %c0_i32_0 : i32, i32
  }
  func.func @transform_8(%arg0: i32) -> (i32, i32) {
    %c0_i32 = arith.constant 0 : i32
    %c0_i32_0 = arith.constant 0 : i32
    return %arg0, %c0_i32 : i32, i32
  }
}

</mosaic_0001>

<bundles_post_ra>
// kernel: tpu_custom_call.1
= control target key start
LH: loop header
LB: loop body
LE: loop exit
PB: predicated region body
PF: predicated region fallthrough
CT: control target
= control target key end

     0   :  { %13 = vsyncpa [#allocation3], 0  ;;  %s1444_s0 = inlined_call_operand.hbm [shape: f32[8,8,16], index: 0, kind: input, shape index: {}]   ;;  %s1445_s1 = inlined_call_operand.hbm [shape: f32[1,16], index: 1, kind: input, shape index: {}]   ;;  %s1446_s2 = inlined_call_operand.vmem [shape: f32[1,16], index: 2, kind: input, shape index: {}]   ;;  %s1447_s3 = inlined_call_operand.hbm [shape: bf16[16,128], index: 3, kind: input, shape index: {}]   ;;  %s1448_s4 = inlined_call_operand.hbm [shape: bf16[32,128], index: 4, kind: input, shape index: {}]   ;;  %s1449_s5 = inlined_call_operand.vmem [shape: f32[1,128], index: 5, kind: input, shape index: {}]   ;;  %s1450_s6 = inlined_call_operand.hbm [shape: bf16[32,128], index: 6, kind: input, shape index: {}]   ;;  %s1451_s7 = inlined_call_operand.vmem [shape: f32[1,128], index: 7, kind: input, shape index: {}]   ;;  %s1452_s8 = inlined_call_operand.hbm [shape: f32[8,128], index: 8, kind: output, shape index: {}]  }
   0x1   :  { %14 = vsyncpa [#allocation6], 0 }
   0x2   :  { %15 = vsyncpa [#allocation9], 0  ;;  %s35_s29 = sshll.u32 %s1445_s1, 4  ;;  %s36_s29 = int_to_ptr.hbm [resolvable:$true] %s35_s29 }
   0x3   :  { %16 = vsyncpa [#allocation4], 0  ;;  %s1213_s30 = smov [#allocation5]   ;;  %s60_s12 = sshll.u32 %s1448_s4, 4  ;;  %s61_s12 = int_to_ptr.hbm [resolvable:$true] %s60_s12 }
   0x4   :  { %s37_s9 = sshll.u32 %s1213_s30, 4  ;;  %s1214_s13 = smov [#allocation8]   ;;  %s38_s9 = int_to_ptr.vmem [resolvable:$true] %s37_s9 }
   0x5   :  { %40 = dma.hbm_to_vmem [thread:$0]  %s36_s29, 16, %s38_s9, [#allocation6]  }
   0x6   :  { %s62_s14 = sshll.u32 %s1214_s13, 4  ;;  %s21_s17 = sshll.u32 %s1444_s0, 4  ;;  %s63_s14 = int_to_ptr.vmem [resolvable:$true] %s62_s14  ;;  %s22_s17 = int_to_ptr.hbm [resolvable:$true] %s21_s17 }
   0x7   :  { %s1215_s1 = smov 64   ;;  %s1216_s18 = smov 4  }
   0x8   :  { %68 = dma.hbm_to_vmem [thread:$0]  %s61_s12, 256, %s63_s14, [#allocation9], %s1215_s1, %s1215_s1, %s1216_s18  }
   0x9   :  { %s1217_s19 = smov [#allocation2]   ;;  %s47_s4 = sshll.u32 %s1447_s3, 4  ;;  %s48_s4 = int_to_ptr.hbm [resolvable:$true] %s47_s4 }
   0xa   :  { %s23_s20 = sshll.u32 %s1217_s19, 4  ;;  %s1218_s23 = smov 128   ;;  %s24_s20 = int_to_ptr.vmem [resolvable:$true] %s23_s20 }
   0xb   :  { %s1219_s24 = smov 8   ;;  %s1220_s25 = smov [#allocation7]  }
   0xc   :  { %29 = dma.hbm_to_vmem [thread:$0]  %s22_s17, 1024, %s24_s20, [#allocation3], %s1218_s23, %s1218_s23, %s1219_s24  }
   0xd   :  { %s49_s0 = sshll.u32 %s1220_s25, 4  ;;  %s75_s28 = sshll.u32 %s1450_s6, 4  ;;  %s50_s0 = int_to_ptr.vmem [resolvable:$true] %s49_s0  ;;  %s76_s28 = int_to_ptr.hbm [resolvable:$true] %s75_s28 }
   0xe   :  { %55 = dma.hbm_to_vmem [thread:$0]  %s48_s4, 128, %s50_s0, [#allocation6], %s1215_s1, %s1215_s1, %s1216_s18  }
   0xf   :  { %s1221_s29 = smov [#allocation10]  }
  0x10   :  { %s77_s30 = sshll.u32 %s1221_s29, 4  ;;  %s78_s30 = int_to_ptr.vmem [resolvable:$true] %s77_s30 }
  0x11   :  { %83 = dma.hbm_to_vmem [thread:$0]  %s76_s28, 256, %s78_s30, [#allocation9], %s1215_s1, %s1215_s1, %s1216_s18  }
  0x12   :  { %1205 = dma.done.wait [#allocation3], 1024  }
  0x13   :  { %1206 = vsyncadd [#allocation3], 4294966272 }
  0x14   :  { %1207 = dma.done.wait [#allocation6], 144  }
  0x15   :  { %1208 = vsyncadd [#allocation6], 4294967152 }
  0x16   :  { %1209 = dma.done.wait [#allocation9], 512  }
  0x17   :  { %1210 = vsyncadd [#allocation9], 4294966784  ;;  %vm115_vm0 = vcmask 130048   ;;  %v107_v0 = vld [vmem:[#allocation2] sm:$0xff]  ;;  %v108_v2 = vld [vmem:[#allocation2 + $0x8] sm:$0xff]  ;;  %v1222_v4 = vmov 16.0  }
  0x18   :  { %v116_v1 = vsel %vm115_vm0, %v107_v0, 0.0  ;;  %v119_v3 = vsel %vm115_vm0, %v108_v2, 0.0  ;;  %979 = vrcp.f32 %v1222_v4  ;;  %v1300_v21 = vld [vmem:[#allocation8 + $0x8] sm:$0xff]  ;;  %v1305_v22 = vld [vmem:[#allocation8] sm:$0xff]  ;;  %v957_v23 = vld [vmem:[#allocation7] sm:$0xff]  ;;  %v1223_v26 = vmov 0  }
  0x19   :  { %117 = vadd.xlane.f32.xlu0 %v116_v1  ;;  %406 = vmatpush.bf16.msra.mxu1 %v1300_v21  ;;  %v1320_v44 = vld [vmem:[#allocation5] ss:$0 sm:$0xff]  ;;  %vm396_vm12 = vcmask 261120   ;;  %s1225_s12 = smov [#allocation11]   ;;  %s905_s16 = sshll.u32 %s1452_s8, 4  ;;  %s906_s16 = int_to_ptr.hbm [resolvable:$true] %s905_s16 }
  0x1a   :  { %464 = vmatpush.bf16.msra.mxu2 %v1300_v21  ;;  %522 = vmatpush.bf16.msra.mxu3 %v1300_v21  ;;  %v1326_v49 = vld [vmem:[%s1446_s2] ss:$0 sm:$0xff]  ;;  %s1224_s2 = smov 32   ;;  %s903_s13 = sshll.u32 %s1225_s12, 4  ;;  %s904_s13 = int_to_ptr.vmem [resolvable:$true] %s903_s13 }
  0x1b   :  { %358 = vmatpush.bf16.msra.mxu0 %v957_v23  ;;  %v1335_v56 = vld [vmem:[%s1449_s5] ss:$0 sm:$0xff]  ;;  %v110_v23 = vld [vmem:[#allocation2 + $0x18] sm:$0xff] }
  0x1d   :  { %407 = vmatpush.bf16.msra.mxu1 %v1305_v22 }
  0x1e   :  { %v980_v5 = vpop.eup %979  ;;  %465 = vmatpush.bf16.msra.mxu2 %v1305_v22  ;;  %523 = vmatpush.bf16.msra.mxu3 %v1305_v22 }
  0x1f   :  { %v141_v6 = vmul.f32 16.0, %v980_v5  ;;  %vm145_vm1 = vweird.f32 %v980_v5 }
  0x20   :  { %408 = vmatmul.bf16.vlgmr.msra.gmra.mxu1 %v1223_v26 }
  0x21   :  { %120 = vadd.xlane.f32.xlu0 %v119_v3  ;;  %v142_v7 = vsub.f32 1.0, %v141_v6  ;;  %580 = vmatpush.bf16.msrb.mxu1 %v1300_v21 }
  0x22   :  { %638 = vmatpush.bf16.msrb.mxu2 %v1300_v21  ;;  %696 = vmatpush.bf16.msrb.mxu3 %v1300_v21 }
  0x23   :  { %v143_v8 = vmul.f32 %v980_v5, %v142_v7 }
  0x25   :  { %v144_v9 = vadd.f32 %v980_v5, %v143_v8  ;;  %581 = vmatpush.bf16.msrb.mxu1 %v1305_v22 }
  0x26   :  { %639 = vmatpush.bf16.msrb.mxu2 %v1305_v22  ;;  %697 = vmatpush.bf16.msrb.mxu3 %v1305_v22 }
  0x27   :  { %v1294_v10 = vsel %vm145_vm1, %v980_v5, %v144_v9 }
  0x29   :  { %754 = vmatpush.bf16.msra.mxu1 %v1300_v21 }
  0x2d   :  { %755 = vmatpush.bf16.msra.mxu1 %v1305_v22 }
  0x8c   :  { %v118_v11 = vpop.xlane.xlu0 %117 }
  0x8d   :  { %v147_v12 = vmul.f32 %v1294_v10, %v118_v11 }
  0x8f   :  { %v155_v13 = vsub.f32 %v107_v0, %v147_v12 }
  0x91   :  { %v163_v14 = vmul.f32 %v155_v13, %v155_v13 }
  0x93   :  { %v171_v15 = vsel %vm115_vm0, %v163_v14, 0.0 }
  0x94   :  { %172 = vadd.xlane.f32.xlu1 %v171_v15  ;;  %v121_v16 = vpop.xlane.xlu0 %120 }
  0x95   :  { %v148_v17 = vmul.f32 %v1294_v10, %v121_v16 }
  0x97   :  { %v156_v18 = vsub.f32 %v108_v2, %v148_v17 }
  0x99   :  { %v164_v19 = vmul.f32 %v156_v18, %v156_v18 }
  0x9b   :  { %v174_v20 = vsel %vm115_vm0, %v164_v19, 0.0 }
  0x9c   :  { %175 = vadd.xlane.f32.xlu1 %v174_v20 }
  0x9d   :  { %v409_v54 = vpop.f32.mrf.mxu1 }
  0xa5   :  { %v411_v55 = vpop.f32.mrf.mxu1 }
 0x107   :  { %v173_v24 = vpop.xlane.xlu1 %172 }
 0x108   :  { %v195_v25 = vmul.f32 %v173_v24, %v1294_v10  ;;  %v125_v24 = vsel %vm115_vm0, %v110_v23, 0.0 }
 0x10a   :  { %v203_v27 = vadd.f32 1e-05, %v195_v25 }
 0x10c   :  { %981 = vrsqrt.f32 %v203_v27  ;;  %vm217_vm3 = vweird.f32 %v203_v27 }
 0x10f   :  { %v176_v28 = vpop.xlane.xlu1 %175 }
 0x110   :  { %v196_v29 = vmul.f32 %v176_v28, %v1294_v10 }
 0x112   :  { %v982_v30 = vpop.eup %981  ;;  %v204_v31 = vadd.f32 1e-05, %v196_v29 }
 0x113   :  { %v212_v32 = vmul.f32 %v982_v30, %v203_v27  ;;  %vm218_vm2 = vweird.f32 %v982_v30 }
 0x114   :  { %983 = vrsqrt.f32 %v204_v31  ;;  %vm219_vm4 = vmor %vm217_vm3, %vm218_vm2  ;;  %vm227_vm6 = vweird.f32 %v204_v31 }
 0x115   :  { %v213_v33 = vmul.f32 %v982_v30, %v212_v32 }
 0x117   :  { %v214_v34 = vmul.f32 0.5, %v213_v33 }
 0x119   :  { %v215_v35 = vsub.f32 1.5, %v214_v34 }
 0x11a   :  { %v984_v36 = vpop.eup %983 }
 0x11b   :  { %v216_v37 = vmul.f32 %v982_v30, %v215_v35  ;;  %v222_v38 = vmul.f32 %v984_v36, %v204_v31  ;;  %vm228_vm5 = vweird.f32 %v984_v36 }
 0x11c   :  { %vm229_vm7 = vmor %vm227_vm6, %vm228_vm5 }
 0x11d   :  { %v223_v39 = vmul.f32 %v984_v36, %v222_v38  ;;  %v220_v40 = vsel %vm219_vm4, %v982_v30, %v216_v37 }
 0x11e   :  { %v291_v43 = vmul.f32 %v220_v40, %v155_v13 }
 0x11f   :  { %v224_v41 = vmul.f32 0.5, %v223_v39 }
 0x120   :  { %v303_v48 = vmul.f32 %v1320_v44, %v291_v43 }
 0x121   :  { %v225_v42 = vsub.f32 1.5, %v224_v41 }
 0x122   :  { %v315_v51 = vadd.f32 %v1326_v49, %v303_v48 }
 0x123   :  { %v226_v45 = vmul.f32 %v984_v36, %v225_v42 }
 0x125   :  { %v230_v46 = vsel %vm229_vm7, %v984_v36, %v226_v45 }
 0x126   :  { %v292_v47 = vmul.f32 %v230_v46, %v156_v18 }
 0x128   :  { %v304_v50 = vmul.f32 %v1320_v44, %v292_v47  ;;  %v109_v47 = vld [vmem:[#allocation2 + $0x10] sm:$0xff] }
 0x129   :  { %v122_v48 = vsel %vm115_vm0, %v109_v47, 0.0 }
 0x12a   :  { %v316_v52 = vadd.f32 %v1326_v49, %v304_v50 }
 0x12c   :  { %v323_v53 = vpack.c.bf16 %v316_v52, %v315_v51 }
 0x12e   :  { %921 = vmatmul.msk.bf16.vlgmr.msra.gmra.mxu0 %vm115_vm0, %v323_v53 }
 0x1ab   :  { %v360_v57 = vpop.f32.mrf.mxu0 }
 0x1ac   :  { %v361_v58 = vadd.f32 %v1335_v56, %v360_v57 }
 0x1ae   :  { %v413_v59 = vadd.f32 %v409_v54, %v361_v58 }
 0x1b0   :  { %985 = vtanh.f32 %v413_v59  ;;  %v933_v61 = vmul.f32 -1.442695, %v413_v59 }
 0x1b2   :  { %987 = vpow2.f32 %v933_v61 }
 0x1b3   :  { %v362_v25 = vpop.f32.mrf.mxu0 }
 0x1b4   :  { %v363_v26 = vadd.f32 %v1335_v56, %v362_v25 }
 0x1b6   :  { %v986_v60 = vpop.eup %985 }
 0x1b7   :  { %436 = vrot.lane.b32.xlu2 %v986_v60, %s1224_s2 }
 0x1b8   :  { %v988_v62 = vpop.eup %987 }
 0x1b9   :  { %v417_v63 = vadd.f32 1.0, %v988_v62 }
 0x1bb   :  { %989 = vrcp.f32 %v417_v63  ;;  %v429_v5 = vand.u32 2147483648, %v417_v63  ;;  %vm423_vm9 = vweird.f32 %v417_v63  ;;  %v427_v6 = vand.u32 2147483647, %v417_v63 }
 0x1bd   :  { %v430_v8 = vor.u32 1.1754944e-38, %v429_v5  ;;  %vm428_vm11 = vcmp.eq.f32.partialorder %v427_v6, 8.507059e+37 }
 0x1c1   :  { %v990_v0 = vpop.eup %989 }
 0x1c2   :  { %v419_v1 = vmul.f32 %v990_v0, %v417_v63  ;;  %vm424_vm8 = vweird.f32 %v990_v0 }
 0x1c3   :  { %vm425_vm10 = vmor %vm423_vm9, %vm424_vm8 }
 0x1c4   :  { %v420_v2 = vsub.f32 1.0, %v419_v1 }
 0x1c6   :  { %v421_v3 = vmul.f32 %v990_v0, %v420_v2 }
 0x1c8   :  { %v422_v4 = vadd.f32 %v990_v0, %v421_v3 }
 0x1ca   :  { %v426_v7 = vsel %vm425_vm10, %v990_v0, %v422_v4 }
 0x1cb   :  { %v431_v11 = vsel %vm428_vm11, %v430_v8, %v426_v7 }
 0x1cc   :  { %v434_v13 = vmul.f32 0.0, %v431_v11 }
 0x211   :  { %v437_v9 = vpop.permute.xlu2 %436 }
 0x212   :  { %v439_v12 = vmul.f32 %v437_v9, %v431_v11 }
 0x214   :  { %441 = vrot.lane.b32.xlu2 %v439_v12, %s1224_s2 }
 0x26e   :  { %v442_v14 = vpop.permute.xlu2 %441 }
 0x26f   :  { %v444_v15 = vadd.f32 %v442_v14, %v434_v13 }
 0x271   :  { %991 = vtanh.f32 %v444_v15 }
 0x277   :  { %v992_v16 = vpop.eup %991 }
 0x278   :  { %447 = vrot.lane.b32.xlu0 %v992_v16, %s1224_s2 }
 0x2a2   :  { %126 = vadd.xlane.f32.xlu0 %v125_v24 }
 0x2ea   :  { %v448_v17 = vpop.permute.xlu0 %447 }
 0x2eb   :  { %v450_v18 = vmul.f32 %v448_v17, %v431_v11 }
 0x2ed   :  { %v451_v19 = vpack.c.bf16 %v450_v18, %v450_v18 }
 0x2ef   :  { %453 = vrot.lane.b32.xlu1 %v451_v19, %s1215_s1 }
 0x315   :  { %v127_v45 = vpop.xlane.xlu0 %126 }
 0x316   :  { %v150_v46 = vmul.f32 %v1294_v10, %v127_v45 }
 0x318   :  { %v158_v50 = vsub.f32 %v110_v23, %v150_v46 }
 0x31a   :  { %v166_v51 = vmul.f32 %v158_v50, %v158_v50 }
 0x31c   :  { %v180_v52 = vsel %vm115_vm0, %v166_v51, 0.0 }
 0x361   :  { %v454_v20 = vpop.permute.xlu1 %453 }
 0x362   :  { %934 = vmatmul.msk.bf16.vlgmr.msra.gmra.mxu2 %vm396_vm12, %v454_v20 }
 0x363   :  { %812 = vmatpush.bf16.msra.mxu2 %v1300_v21 }
 0x367   :  { %813 = vmatpush.bf16.msra.mxu2 %v1305_v22 }
 0x3e5   :  { %v467_v27 = vpop.f32.mrf.mxu2 }
 0x3e6   :  { %v471_v28 = vadd.f32 %v467_v27, %v363_v26 }
 0x3e8   :  { %993 = vtanh.f32 %v471_v28  ;;  %v935_v31 = vmul.f32 -1.442695, %v471_v28 }
 0x3ea   :  { %995 = vpow2.f32 %v935_v31 }
 0x3ed   :  { %v469_v29 = vpop.f32.mrf.mxu2 }
 0x3ee   :  { %v994_v30 = vpop.eup %993 }
 0x3ef   :  { %494 = vrot.lane.b32.xlu2 %v994_v30, %s1224_s2 }
 0x3f0   :  { %v996_v32 = vpop.eup %995 }
 0x3f1   :  { %v475_v21 = vadd.f32 1.0, %v996_v32 }
 0x3f3   :  { %997 = vrcp.f32 %v475_v21  ;;  %v487_v37 = vand.u32 2147483648, %v475_v21  ;;  %vm481_vm14 = vweird.f32 %v475_v21  ;;  %v485_v38 = vand.u32 2147483647, %v475_v21 }
 0x3f5   :  { %v488_v40 = vor.u32 1.1754944e-38, %v487_v37  ;;  %vm486_vm1 = vcmp.eq.f32.partialorder %v485_v38, 8.507059e+37 }
 0x3f9   :  { %v998_v22 = vpop.eup %997 }
 0x3fa   :  { %v477_v33 = vmul.f32 %v998_v22, %v475_v21  ;;  %vm482_vm13 = vweird.f32 %v998_v22 }
 0x3fb   :  { %vm483_vm15 = vmor %vm481_vm14, %vm482_vm13 }
 0x3fc   :  { %v478_v34 = vsub.f32 1.0, %v477_v33 }
 0x3fe   :  { %v479_v35 = vmul.f32 %v998_v22, %v478_v34 }
 0x400   :  { %v480_v36 = vadd.f32 %v998_v22, %v479_v35 }
 0x402   :  { %v484_v39 = vsel %vm483_vm15, %v998_v22, %v480_v36 }
 0x403   :  { %v489_v42 = vsel %vm486_vm1, %v488_v40, %v484_v39 }
 0x404   :  { %v492_v53 = vmul.f32 %v489_v42, %v444_v15 }
 0x449   :  { %v495_v41 = vpop.permute.xlu2 %494 }
 0x44a   :  { %v497_v43 = vmul.f32 %v495_v41, %v489_v42 }
 0x44c   :  { %499 = vrot.lane.b32.xlu2 %v497_v43, %s1224_s2 }
 0x475   :  { %123 = vadd.xlane.f32.xlu2 %v122_v48 }
 0x47d   :  { %181 = vadd.xlane.f32.xlu2 %v180_v52 }
 0x4a6   :  { %v500_v54 = vpop.permute.xlu2 %499 }
 0x4a7   :  { %v1352_v55 = vadd.f32 %v500_v54, %v492_v53 }
 0x4a9   :  { %999 = vtanh.f32 %v1352_v55 }
 0x4af   :  { %v1000_v57 = vpop.eup %999 }
 0x4b0   :  { %505 = vrot.lane.b32.xlu1 %v1000_v57, %s1224_s2 }
 0x4e8   :  { %v124_v58 = vpop.xlane.xlu2 %123 }
 0x4e9   :  { %v149_v59 = vmul.f32 %v1294_v10, %v124_v58 }
 0x4eb   :  { %v157_v60 = vsub.f32 %v109_v47, %v149_v59 }
 0x4ed   :  { %v165_v61 = vmul.f32 %v157_v60, %v157_v60 }
 0x4ef   :  { %v177_v62 = vsel %vm115_vm0, %v165_v61, 0.0 }
 0x4f0   :  { %178 = vadd.xlane.f32.xlu1 %v177_v62  ;;  %v182_v2 = vpop.xlane.xlu2 %181 }
 0x4f1   :  { %v198_v3 = vmul.f32 %v182_v2, %v1294_v10 }
 0x4f3   :  { %v206_v4 = vadd.f32 1e-05, %v198_v3 }
 0x4f5   :  { %1001 = vrsqrt.f32 %v206_v4  ;;  %vm247_vm2 = vweird.f32 %v206_v4 }
 0x4fb   :  { %v1002_v5 = vpop.eup %1001 }
 0x4fc   :  { %v242_v6 = vmul.f32 %v1002_v5, %v206_v4  ;;  %vm248_vm3 = vweird.f32 %v1002_v5 }
 0x4fd   :  { %vm249_vm4 = vmor %vm247_vm2, %vm248_vm3 }
 0x4fe   :  { %v243_v7 = vmul.f32 %v1002_v5, %v242_v6 }
 0x500   :  { %v244_v12 = vmul.f32 0.5, %v243_v7 }
 0x502   :  { %v245_v13 = vsub.f32 1.5, %v244_v12 }
 0x504   :  { %v246_v15 = vmul.f32 %v1002_v5, %v245_v13 }
 0x506   :  { %v250_v18 = vsel %vm249_vm4, %v1002_v5, %v246_v15 }
 0x507   :  { %v294_v23 = vmul.f32 %v250_v18, %v158_v50 }
 0x509   :  { %v306_v27 = vmul.f32 %v1320_v44, %v294_v23 }
 0x50b   :  { %v318_v30 = vadd.f32 %v1326_v49, %v306_v27 }
 0x522   :  { %v506_v63 = vpop.permute.xlu1 %505 }
 0x523   :  { %v508_v0 = vmul.f32 %v506_v63, %v489_v42 }
 0x525   :  { %v509_v1 = vpack.c.bf16 %v508_v0, %v508_v0  ;;  %v112_v0 = vld [vmem:[#allocation2 + $0x28] sm:$0xff] }
 0x527   :  { %511 = vrot.lane.b32.xlu0 %v509_v1, %s1215_s1  ;;  %v131_v1 = vsel %vm115_vm0, %v112_v0, 0.0 }
 0x563   :  { %v179_v8 = vpop.xlane.xlu1 %178 }
 0x564   :  { %v197_v9 = vmul.f32 %v179_v8, %v1294_v10 }
 0x566   :  { %v205_v11 = vadd.f32 1e-05, %v197_v9 }
 0x568   :  { %1003 = vrsqrt.f32 %v205_v11  ;;  %vm237_vm5 = vweird.f32 %v205_v11 }
 0x56e   :  { %v1004_v14 = vpop.eup %1003 }
 0x56f   :  { %v232_v16 = vmul.f32 %v1004_v14, %v205_v11  ;;  %vm238_vm6 = vweird.f32 %v1004_v14  ;;  %v111_v11 = vld [vmem:[#allocation2 + $0x20] sm:$0xff] }
 0x570   :  { %vm239_vm7 = vmor %vm237_vm5, %vm238_vm6  ;;  %v128_v12 = vsel %vm115_vm0, %v111_v11, 0.0 }
 0x571   :  { %v233_v17 = vmul.f32 %v1004_v14, %v232_v16 }
 0x573   :  { %v234_v19 = vmul.f32 0.5, %v233_v17 }
 0x575   :  { %v235_v20 = vsub.f32 1.5, %v234_v19 }
 0x577   :  { %v236_v24 = vmul.f32 %v1004_v14, %v235_v20 }
 0x579   :  { %v240_v25 = vsel %vm239_vm7, %v1004_v14, %v236_v24 }
 0x57a   :  { %v293_v26 = vmul.f32 %v240_v25, %v157_v60 }
 0x57c   :  { %v305_v28 = vmul.f32 %v1320_v44, %v293_v26 }
 0x57e   :  { %v317_v29 = vadd.f32 %v1326_v49, %v305_v28 }
 0x580   :  { %v324_v31 = vpack.c.bf16 %v318_v30, %v317_v29 }
 0x582   :  { %922 = vmatmul.msk.bf16.gmra.mxu0 %vm115_vm0, %v324_v31 }
 0x599   :  { %v512_v32 = vpop.permute.xlu0 %511 }
 0x59a   :  { %936 = vmatmul.msk.bf16.vlgmr.msra.gmra.mxu3 %vm396_vm12, %v512_v32 }
 0x5ff   :  { %v365_v21 = vpop.f32.mrf.mxu0 }
 0x600   :  { %v366_v22 = vadd.f32 %v1335_v56, %v365_v21 }
 0x607   :  { %v367_v2 = vpop.f32.mrf.mxu0 }
 0x61d   :  { %v525_v33 = vpop.f32.mrf.mxu3 }
 0x61e   :  { %v529_v34 = vadd.f32 %v525_v33, %v366_v22 }
 0x620   :  { %1005 = vtanh.f32 %v529_v34  ;;  %v937_v37 = vmul.f32 -1.442695, %v529_v34 }
 0x622   :  { %1007 = vpow2.f32 %v937_v37 }
 0x625   :  { %v527_v35 = vpop.f32.mrf.mxu3 }
 0x626   :  { %v1006_v36 = vpop.eup %1005 }
 0x627   :  { %552 = vrot.lane.b32.xlu2 %v1006_v36, %s1224_s2 }
 0x628   :  { %v1008_v38 = vpop.eup %1007 }
 0x629   :  { %v533_v39 = vadd.f32 1.0, %v1008_v38 }
 0x62b   :  { %1009 = vrcp.f32 %v533_v39  ;;  %v545_v46 = vand.u32 2147483648, %v533_v39  ;;  %vm539_vm9 = vweird.f32 %v533_v39  ;;  %v543_v47 = vand.u32 2147483647, %v533_v39 }
 0x62d   :  { %v546_v50 = vor.u32 1.1754944e-38, %v545_v46  ;;  %vm544_vm11 = vcmp.eq.f32.partialorder %v543_v47, 8.507059e+37 }
 0x631   :  { %v1010_v40 = vpop.eup %1009 }
 0x632   :  { %v535_v41 = vmul.f32 %v1010_v40, %v533_v39  ;;  %vm540_vm8 = vweird.f32 %v1010_v40 }
 0x633   :  { %vm541_vm10 = vmor %vm539_vm9, %vm540_vm8 }
 0x634   :  { %v536_v42 = vsub.f32 1.0, %v535_v41 }
 0x636   :  { %v537_v43 = vmul.f32 %v1010_v40, %v536_v42 }
 0x638   :  { %v538_v45 = vadd.f32 %v1010_v40, %v537_v43 }
 0x63a   :  { %v542_v48 = vsel %vm541_vm10, %v1010_v40, %v538_v45 }
 0x63b   :  { %v547_v52 = vsel %vm544_vm11, %v546_v50, %v542_v48 }
 0x63c   :  { %v550_v54 = vmul.f32 %v547_v52, %v1352_v55  ;;  %v368_v55 = vadd.f32 %v1335_v56, %v367_v2 }
 0x681   :  { %v553_v51 = vpop.permute.xlu2 %552 }
 0x682   :  { %v555_v53 = vmul.f32 %v553_v51, %v547_v52 }
 0x684   :  { %557 = vrot.lane.b32.xlu1 %v555_v53, %s1224_s2 }
 0x6ae   :  { %132 = vadd.xlane.f32.xlu1 %v131_v1 }
 0x6f6   :  { %v558_v57 = vpop.permute.xlu1 %557 }
 0x6f7   :  { %v560_v58 = vadd.f32 %v558_v57, %v550_v54 }
 0x6f9   :  { %1011 = vtanh.f32 %v560_v58 }
 0x6ff   :  { %v1012_v59 = vpop.eup %1011 }
 0x700   :  { %563 = vrot.lane.b32.xlu0 %v1012_v59, %s1224_s2 }
 0x721   :  { %v133_v13 = vpop.xlane.xlu1 %132 }
 0x722   :  { %v152_v14 = vmul.f32 %v1294_v10, %v133_v13 }
 0x724   :  { %v160_v16 = vsub.f32 %v112_v0, %v152_v14 }
 0x726   :  { %v168_v17 = vmul.f32 %v160_v16, %v160_v16 }
 0x728   :  { %v186_v19 = vsel %vm115_vm0, %v168_v17, 0.0 }
 0x772   :  { %v564_v60 = vpop.permute.xlu0 %563 }
 0x773   :  { %v566_v61 = vmul.f32 %v564_v60, %v547_v52 }
 0x775   :  { %v567_v62 = vpack.c.bf16 %v566_v61, %v566_v61 }
 0x777   :  { %569 = vrot.lane.b32.xlu2 %v567_v62, %s1215_s1 }
 0x7d1   :  { %v570_v63 = vpop.permute.xlu2 %569 }
 0x7d2   :  { %938 = vmatmul.msk.bf16.vlgmr.msrb.gmra.mxu1 %vm396_vm12, %v570_v63 }
 0x84f   :  { %v583_v3 = vpop.f32.mrf.mxu1 }
 0x850   :  { %v587_v4 = vadd.f32 %v583_v3, %v368_v55 }
 0x852   :  { %1013 = vtanh.f32 %v587_v4  ;;  %v939_v7 = vmul.f32 -1.442695, %v587_v4 }
 0x854   :  { %1015 = vpow2.f32 %v939_v7 }
 0x857   :  { %v585_v5 = vpop.f32.mrf.mxu1 }
 0x858   :  { %v1014_v6 = vpop.eup %1013 }
 0x859   :  { %610 = vrot.lane.b32.xlu0 %v1014_v6, %s1224_s2 }
 0x85a   :  { %v1016_v8 = vpop.eup %1015 }
 0x85b   :  { %v591_v9 = vadd.f32 1.0, %v1016_v8 }
 0x85d   :  { %1017 = vrcp.f32 %v591_v9  ;;  %v603_v25 = vand.u32 2147483648, %v591_v9  ;;  %vm597_vm14 = vweird.f32 %v591_v9  ;;  %v601_v26 = vand.u32 2147483647, %v591_v9 }
 0x85f   :  { %v604_v28 = vor.u32 1.1754944e-38, %v603_v25  ;;  %vm602_vm1 = vcmp.eq.f32.partialorder %v601_v26, 8.507059e+37 }
 0x863   :  { %v1018_v15 = vpop.eup %1017 }
 0x864   :  { %v593_v18 = vmul.f32 %v1018_v15, %v591_v9  ;;  %vm598_vm13 = vweird.f32 %v1018_v15 }
 0x865   :  { %vm599_vm15 = vmor %vm597_vm14, %vm598_vm13 }
 0x866   :  { %v594_v20 = vsub.f32 1.0, %v593_v18 }
 0x868   :  { %v595_v23 = vmul.f32 %v1018_v15, %v594_v20 }
 0x86a   :  { %v596_v24 = vadd.f32 %v1018_v15, %v595_v23 }
 0x86c   :  { %v600_v27 = vsel %vm599_vm15, %v1018_v15, %v596_v24 }
 0x86d   :  { %v605_v30 = vsel %vm602_vm1, %v604_v28, %v600_v27 }
 0x86e   :  { %v608_v32 = vmul.f32 %v605_v30, %v560_v58 }
 0x883   :  { %129 = vadd.xlane.f32.xlu0 %v128_v12 }
 0x88b   :  { %187 = vadd.xlane.f32.xlu0 %v186_v19 }
 0x8cb   :  { %v611_v29 = vpop.permute.xlu0 %610 }
 0x8cc   :  { %v613_v31 = vmul.f32 %v611_v29, %v605_v30 }
 0x8ce   :  { %615 = vrot.lane.b32.xlu2 %v613_v31, %s1224_s2 }
 0x8f6   :  { %v130_v34 = vpop.xlane.xlu0 %129 }
 0x8f7   :  { %v151_v35 = vmul.f32 %v1294_v10, %v130_v34 }
 0x8f9   :  { %v159_v36 = vsub.f32 %v111_v11, %v151_v35 }
 0x8fb   :  { %v167_v37 = vmul.f32 %v159_v36, %v159_v36 }
 0x8fd   :  { %v183_v38 = vsel %vm115_vm0, %v167_v37, 0.0 }
 0x8fe   :  { %v188_v42 = vpop.xlane.xlu0 %187 }
 0x8ff   :  { %v200_v43 = vmul.f32 %v188_v42, %v1294_v10 }
 0x901   :  { %v208_v45 = vadd.f32 1e-05, %v200_v43 }
 0x903   :  { %vm267_vm2 = vweird.f32 %v208_v45 }
 0x928   :  { %v616_v21 = vpop.permute.xlu2 %615 }
 0x929   :  { %v1381_v22 = vadd.f32 %v616_v21, %v608_v32 }
 0x92b   :  { %1019 = vtanh.f32 %v1381_v22 }
 0x92c   :  { %1021 = vrsqrt.f32 %v208_v45 }
 0x931   :  { %v1020_v33 = vpop.eup %1019 }
 0x932   :  { %621 = vrot.lane.b32.xlu2 %v1020_v33, %s1224_s2  ;;  %v1022_v46 = vpop.eup %1021 }
 0x933   :  { %v262_v47 = vmul.f32 %v1022_v46, %v208_v45  ;;  %vm268_vm3 = vweird.f32 %v1022_v46 }
 0x934   :  { %vm269_vm4 = vmor %vm267_vm2, %vm268_vm3 }
 0x935   :  { %v263_v48 = vmul.f32 %v1022_v46, %v262_v47 }
 0x937   :  { %v264_v53 = vmul.f32 0.5, %v263_v48 }
 0x939   :  { %v265_v54 = vsub.f32 1.5, %v264_v53 }
 0x93b   :  { %v266_v58 = vmul.f32 %v1022_v46, %v265_v54 }
 0x93d   :  { %v270_v61 = vsel %vm269_vm4, %v1022_v46, %v266_v58  ;;  %v114_v46 = vld [vmem:[#allocation2 + $0x38] sm:$0xff] }
 0x93e   :  { %v296_v0 = vmul.f32 %v270_v61, %v160_v16  ;;  %v137_v47 = vsel %vm115_vm0, %v114_v46, 0.0 }
 0x940   :  { %v308_v3 = vmul.f32 %v1320_v44, %v296_v0 }
 0x942   :  { %v320_v6 = vadd.f32 %v1326_v49, %v308_v3 }
 0x95b   :  { %184 = vadd.xlane.f32.xlu2 %v183_v38 }
 0x98c   :  { %v622_v39 = vpop.permute.xlu2 %621 }
 0x98d   :  { %v624_v40 = vmul.f32 %v622_v39, %v605_v30 }
 0x98f   :  { %v625_v41 = vpack.c.bf16 %v624_v40, %v624_v40 }
 0x991   :  { %627 = vrot.lane.b32.xlu1 %v625_v41, %s1215_s1 }
 0x9ce   :  { %v185_v50 = vpop.xlane.xlu2 %184 }
 0x9cf   :  { %v199_v51 = vmul.f32 %v185_v50, %v1294_v10 }
 0x9d1   :  { %v207_v52 = vadd.f32 1e-05, %v199_v51 }
 0x9d3   :  { %1023 = vrsqrt.f32 %v207_v52  ;;  %vm257_vm5 = vweird.f32 %v207_v52 }
 0x9d9   :  { %v1024_v57 = vpop.eup %1023 }
 0x9da   :  { %v252_v59 = vmul.f32 %v1024_v57, %v207_v52  ;;  %vm258_vm6 = vweird.f32 %v1024_v57  ;;  %v113_v52 = vld [vmem:[#allocation2 + $0x30] sm:$0xff] }
 0x9db   :  { %vm259_vm7 = vmor %vm257_vm5, %vm258_vm6  ;;  %v134_v53 = vsel %vm115_vm0, %v113_v52, 0.0 }
 0x9dc   :  { %v253_v60 = vmul.f32 %v1024_v57, %v252_v59 }
 0x9de   :  { %v254_v62 = vmul.f32 0.5, %v253_v60 }
 0x9e0   :  { %v255_v63 = vsub.f32 1.5, %v254_v62 }
 0x9e2   :  { %v256_v1 = vmul.f32 %v1024_v57, %v255_v63 }
 0x9e4   :  { %v260_v2 = vsel %vm259_vm7, %v1024_v57, %v256_v1 }
 0x9e5   :  { %v295_v55 = vmul.f32 %v260_v2, %v159_v36 }
 0x9e7   :  { %v307_v4 = vmul.f32 %v1320_v44, %v295_v55 }
 0x9e9   :  { %v319_v5 = vadd.f32 %v1326_v49, %v307_v4 }
 0x9eb   :  { %v325_v7 = vpack.c.bf16 %v320_v6, %v319_v5 }
 0x9ed   :  { %923 = vmatmul.msk.bf16.gmra.mxu0 %vm115_vm0, %v325_v7 }
 0xa03   :  { %v628_v8 = vpop.permute.xlu1 %627 }
 0xa04   :  { %940 = vmatmul.msk.bf16.vlgmr.msrb.gmra.mxu2 %vm396_vm12, %v628_v8 }
 0xa6a   :  { %v370_v9 = vpop.f32.mrf.mxu0 }
 0xa6b   :  { %v371_v11 = vadd.f32 %v1335_v56, %v370_v9 }
 0xa72   :  { %v372_v40 = vpop.f32.mrf.mxu0 }
 0xa73   :  { %v373_v41 = vadd.f32 %v1335_v56, %v372_v40 }
 0xa87   :  { %v641_v12 = vpop.f32.mrf.mxu2 }
 0xa88   :  { %v645_v13 = vadd.f32 %v641_v12, %v371_v11 }
 0xa8a   :  { %1025 = vtanh.f32 %v645_v13  ;;  %v941_v16 = vmul.f32 -1.442695, %v645_v13 }
 0xa8c   :  { %1027 = vpow2.f32 %v941_v16 }
 0xa8f   :  { %v643_v14 = vpop.f32.mrf.mxu2 }
 0xa90   :  { %v1026_v15 = vpop.eup %1025 }
 0xa91   :  { %668 = vrot.lane.b32.xlu0 %v1026_v15, %s1224_s2 }
 0xa92   :  { %v1028_v17 = vpop.eup %1027 }
 0xa93   :  { %v649_v18 = vadd.f32 1.0, %v1028_v17 }
 0xa95   :  { %1029 = vrcp.f32 %v649_v18  ;;  %v661_v26 = vand.u32 2147483648, %v649_v18  ;;  %vm655_vm9 = vweird.f32 %v649_v18  ;;  %v659_v27 = vand.u32 2147483647, %v649_v18 }
 0xa97   :  { %v662_v29 = vor.u32 1.1754944e-38, %v661_v26  ;;  %vm660_vm11 = vcmp.eq.f32.partialorder %v659_v27, 8.507059e+37 }
 0xa9b   :  { %v1030_v19 = vpop.eup %1029 }
 0xa9c   :  { %v651_v20 = vmul.f32 %v1030_v19, %v649_v18  ;;  %vm656_vm8 = vweird.f32 %v1030_v19 }
 0xa9d   :  { %vm657_vm10 = vmor %vm655_vm9, %vm656_vm8 }
 0xa9e   :  { %v652_v23 = vsub.f32 1.0, %v651_v20 }
 0xaa0   :  { %v653_v24 = vmul.f32 %v1030_v19, %v652_v23 }
 0xaa2   :  { %v654_v25 = vadd.f32 %v1030_v19, %v653_v24 }
 0xaa4   :  { %v658_v28 = vsel %vm657_vm10, %v1030_v19, %v654_v25 }
 0xaa5   :  { %v663_v31 = vsel %vm660_vm11, %v662_v29, %v658_v28 }
 0xaa6   :  { %v666_v21 = vmul.f32 %v663_v31, %v1381_v22 }
 0xb03   :  { %v669_v30 = vpop.permute.xlu0 %668 }
 0xb04   :  { %v671_v32 = vmul.f32 %v669_v30, %v663_v31 }
 0xb06   :  { %673 = vrot.lane.b32.xlu2 %v671_v32, %s1224_s2 }
 0xb2f   :  { %135 = vadd.xlane.f32.xlu2 %v134_v53 }
 0xb60   :  { %v674_v33 = vpop.permute.xlu2 %673 }
 0xb61   :  { %v676_v34 = vadd.f32 %v674_v33, %v666_v21 }
 0xb63   :  { %1031 = vtanh.f32 %v676_v34 }
 0xb69   :  { %v1032_v35 = vpop.eup %1031 }
 0xb6a   :  { %679 = vrot.lane.b32.xlu1 %v1032_v35, %s1224_s2 }
 0xba2   :  { %v136_v13 = vpop.xlane.xlu2 %135 }
 0xba3   :  { %v153_v14 = vmul.f32 %v1294_v10, %v136_v13 }
 0xba5   :  { %v161_v15 = vsub.f32 %v113_v52, %v153_v14 }
 0xba7   :  { %v169_v16 = vmul.f32 %v161_v15, %v161_v15 }
 0xba9   :  { %v189_v17 = vsel %vm115_vm0, %v169_v16, 0.0 }
 0xbdc   :  { %v680_v36 = vpop.permute.xlu1 %679 }
 0xbdd   :  { %v682_v37 = vmul.f32 %v680_v36, %v663_v31 }
 0xbdf   :  { %v683_v38 = vpack.c.bf16 %v682_v37, %v682_v37 }
 0xbe1   :  { %685 = vrot.lane.b32.xlu0 %v683_v38, %s1215_s1 }
 0xc53   :  { %v686_v39 = vpop.permute.xlu0 %685 }
 0xc54   :  { %942 = vmatmul.msk.bf16.vlgmr.msrb.gmra.mxu3 %vm396_vm12, %v686_v39 }
 0xcd7   :  { %v699_v42 = vpop.f32.mrf.mxu3 }
 0xcd8   :  { %v703_v43 = vadd.f32 %v699_v42, %v373_v41 }
 0xcda   :  { %1033 = vtanh.f32 %v703_v43  ;;  %v943_v48 = vmul.f32 -1.442695, %v703_v43 }
 0xcdc   :  { %1035 = vpow2.f32 %v943_v48 }
 0xcdf   :  { %v701_v22 = vpop.f32.mrf.mxu3 }
 0xce0   :  { %v1034_v45 = vpop.eup %1033 }
 0xce1   :  { %726 = vrot.lane.b32.xlu1 %v1034_v45, %s1224_s2 }
 0xce2   :  { %v1036_v50 = vpop.eup %1035 }
 0xce3   :  { %v707_v51 = vadd.f32 1.0, %v1036_v50 }
 0xce5   :  { %1037 = vrcp.f32 %v707_v51  ;;  %v719_v61 = vand.u32 2147483648, %v707_v51  ;;  %vm713_vm14 = vweird.f32 %v707_v51  ;;  %v717_v62 = vand.u32 2147483647, %v707_v51 }
 0xce7   :  { %v720_v0 = vor.u32 1.1754944e-38, %v719_v61  ;;  %vm718_vm1 = vcmp.eq.f32.partialorder %v717_v62, 8.507059e+37 }
 0xceb   :  { %v1038_v54 = vpop.eup %1037 }
 0xcec   :  { %v709_v57 = vmul.f32 %v1038_v54, %v707_v51  ;;  %vm714_vm13 = vweird.f32 %v1038_v54 }
 0xced   :  { %vm715_vm15 = vmor %vm713_vm14, %vm714_vm13 }
 0xcee   :  { %v710_v58 = vsub.f32 1.0, %v709_v57 }
 0xcf0   :  { %v711_v59 = vmul.f32 %v1038_v54, %v710_v58 }
 0xcf2   :  { %v712_v60 = vadd.f32 %v1038_v54, %v711_v59 }
 0xcf4   :  { %v716_v63 = vsel %vm715_vm15, %v1038_v54, %v712_v60 }
 0xcf5   :  { %v721_v2 = vsel %vm718_vm1, %v720_v0, %v716_v63 }
 0xcf6   :  { %v724_v8 = vmul.f32 %v721_v2, %v676_v34 }
 0xd0b   :  { %138 = vadd.xlane.f32.xlu1 %v137_v47 }
 0xd53   :  { %v727_v1 = vpop.permute.xlu1 %726 }
 0xd54   :  { %v729_v55 = vmul.f32 %v727_v1, %v721_v2 }
 0xd56   :  { %731 = vrot.lane.b32.xlu0 %v729_v55, %s1224_s2 }
 0xd7e   :  { %v139_v3 = vpop.xlane.xlu1 %138 }
 0xd7f   :  { %v154_v4 = vmul.f32 %v1294_v10, %v139_v3 }
 0xd81   :  { %v162_v5 = vsub.f32 %v114_v46, %v154_v4 }
 0xd83   :  { %v170_v6 = vmul.f32 %v162_v5, %v162_v5 }
 0xd85   :  { %v192_v7 = vsel %vm115_vm0, %v170_v6, 0.0 }
 0xd86   :  { %193 = vadd.xlane.f32.xlu2 %v192_v7 }
 0xdc8   :  { %v732_v9 = vpop.permute.xlu0 %731 }
 0xdc9   :  { %v1410_v11 = vadd.f32 %v732_v9, %v724_v8 }
 0xdcb   :  { %1039 = vtanh.f32 %v1410_v11 }
 0xdd1   :  { %v1040_v12 = vpop.eup %1039 }
 0xdd2   :  { %737 = vrot.lane.b32.xlu0 %v1040_v12, %s1224_s2 }
 0xdf9   :  { %v194_v23 = vpop.xlane.xlu2 %193 }
 0xdfa   :  { %v202_v24 = vmul.f32 %v194_v23, %v1294_v10 }
 0xdfc   :  { %190 = vadd.xlane.f32.xlu0 %v189_v17  ;;  %v210_v25 = vadd.f32 1e-05, %v202_v24 }
 0xdfe   :  { %1041 = vrsqrt.f32 %v210_v25  ;;  %vm287_vm2 = vweird.f32 %v210_v25 }
 0xe04   :  { %v1042_v26 = vpop.eup %1041 }
 0xe05   :  { %v282_v27 = vmul.f32 %v1042_v26, %v210_v25  ;;  %vm288_vm3 = vweird.f32 %v1042_v26 }
 0xe06   :  { %vm289_vm4 = vmor %vm287_vm2, %vm288_vm3 }
 0xe07   :  { %v283_v28 = vmul.f32 %v1042_v26, %v282_v27 }
 0xe09   :  { %v284_v32 = vmul.f32 0.5, %v283_v28 }
 0xe0b   :  { %v285_v21 = vsub.f32 1.5, %v284_v32 }
 0xe0d   :  { %v286_v34 = vmul.f32 %v1042_v26, %v285_v21 }
 0xe0f   :  { %v290_v37 = vsel %vm289_vm4, %v1042_v26, %v286_v34 }
 0xe10   :  { %v298_v40 = vmul.f32 %v290_v37, %v162_v5 }
 0xe12   :  { %v310_v43 = vmul.f32 %v1320_v44, %v298_v40  ;;  %v961_v40 = vld [vmem:[#allocation10 + $0x8] sm:$0xff] }
 0xe13   :  { %890 = vmatpush.bf16.msra.mxu3 %v961_v40 }
 0xe14   :  { %v322_v46 = vadd.f32 %v1326_v49, %v310_v43 }
 0xe44   :  { %v738_v18 = vpop.permute.xlu0 %737 }
 0xe45   :  { %v740_v19 = vmul.f32 %v738_v18, %v721_v2 }
 0xe47   :  { %v741_v20 = vpack.c.bf16 %v740_v19, %v740_v19 }
 0xe49   :  { %743 = vrot.lane.b32.xlu1 %v741_v20, %s1215_s1 }
 0xe6f   :  { %v191_v29 = vpop.xlane.xlu0 %190 }
 0xe70   :  { %v201_v30 = vmul.f32 %v191_v29, %v1294_v10 }
 0xe72   :  { %v209_v31 = vadd.f32 1e-05, %v201_v30 }
 0xe74   :  { %1043 = vrsqrt.f32 %v209_v31  ;;  %vm277_vm5 = vweird.f32 %v209_v31 }
 0xe7a   :  { %v1044_v33 = vpop.eup %1043 }
 0xe7b   :  { %v272_v35 = vmul.f32 %v1044_v33, %v209_v31  ;;  %vm278_vm6 = vweird.f32 %v1044_v33 }
 0xe7c   :  { %vm279_vm7 = vmor %vm277_vm5, %vm278_vm6 }
 0xe7d   :  { %v273_v36 = vmul.f32 %v1044_v33, %v272_v35 }
 0xe7f   :  { %v274_v38 = vmul.f32 0.5, %v273_v36 }
 0xe81   :  { %v275_v39 = vsub.f32 1.5, %v274_v38 }
 0xe83   :  { %v276_v41 = vmul.f32 %v1044_v33, %v275_v39 }
 0xe85   :  { %v280_v10 = vsel %vm279_vm7, %v1044_v33, %v276_v41  ;;  %v960_v41 = vld [vmem:[#allocation10] sm:$0xff] }
 0xe86   :  { %v297_v42 = vmul.f32 %v280_v10, %v161_v15  ;;  %891 = vmatpush.bf16.msra.mxu3 %v960_v41 }
 0xe88   :  { %v309_v22 = vmul.f32 %v1320_v44, %v297_v42 }
 0xe8a   :  { %v321_v45 = vadd.f32 %v1326_v49, %v309_v22 }
 0xe8c   :  { %v326_v47 = vpack.c.bf16 %v322_v46, %v321_v45  ;;  %v978_v45 = vld [vmem:[%s1451_s7] ss:$0 sm:$0xff] }
 0xe8e   :  { %924 = vmatmul.msk.bf16.gmra.mxu0 %vm115_vm0, %v326_v47 }
 0xebb   :  { %v744_v48 = vpop.permute.xlu1 %743 }
 0xebc   :  { %944 = vmatmul.msk.bf16.vlgmr.msra.gmra.mxu1 %vm396_vm12, %v744_v48 }
 0xf0b   :  { %v375_v50 = vpop.f32.mrf.mxu0 }
 0xf0c   :  { %v376_v51 = vadd.f32 %v1335_v56, %v375_v50 }
 0xf13   :  { %v377_v16 = vpop.f32.mrf.mxu0 }
 0xf14   :  { %v378_v17 = vadd.f32 %v1335_v56, %v377_v16 }
 0xf39   :  { %v757_v52 = vpop.f32.mrf.mxu1 }
 0xf3a   :  { %v761_v53 = vadd.f32 %v757_v52, %v376_v51 }
 0xf3c   :  { %1045 = vtanh.f32 %v761_v53  ;;  %v945_v44 = vmul.f32 -1.442695, %v761_v53 }
 0xf3e   :  { %1047 = vpow2.f32 %v945_v44 }
 0xf41   :  { %v759_v54 = vpop.f32.mrf.mxu1 }
 0xf42   :  { %v1046_v57 = vpop.eup %1045 }
 0xf43   :  { %784 = vrot.lane.b32.xlu2 %v1046_v57, %s1224_s2 }
 0xf44   :  { %v1048_v58 = vpop.eup %1047 }
 0xf45   :  { %v765_v49 = vadd.f32 1.0, %v1048_v58 }
 0xf47   :  { %1049 = vrcp.f32 %v765_v49  ;;  %v777_v0 = vand.u32 2147483648, %v765_v49  ;;  %vm771_vm8 = vweird.f32 %v765_v49  ;;  %v775_v1 = vand.u32 2147483647, %v765_v49 }
 0xf49   :  { %v778_v55 = vor.u32 1.1754944e-38, %v777_v0  ;;  %vm776_vm10 = vcmp.eq.f32.partialorder %v775_v1, 8.507059e+37 }
 0xf4d   :  { %v1050_v59 = vpop.eup %1049 }
 0xf4e   :  { %v767_v60 = vmul.f32 %v1050_v59, %v765_v49  ;;  %vm772_vm0 = vweird.f32 %v1050_v59 }
 0xf4f   :  { %vm773_vm9 = vmor %vm771_vm8, %vm772_vm0 }
 0xf50   :  { %v768_v61 = vsub.f32 1.0, %v767_v60 }
 0xf52   :  { %v769_v62 = vmul.f32 %v1050_v59, %v768_v61 }
 0xf54   :  { %v770_v63 = vadd.f32 %v1050_v59, %v769_v62 }
 0xf56   :  { %v774_v2 = vsel %vm773_vm9, %v1050_v59, %v770_v63 }
 0xf57   :  { %v779_v4 = vsel %vm776_vm10, %v778_v55, %v774_v2 }
 0xf58   :  { %v782_v6 = vmul.f32 %v779_v4, %v1410_v11 }
 0xf9d   :  { %v785_v3 = vpop.permute.xlu2 %784 }
 0xf9e   :  { %v787_v5 = vmul.f32 %v785_v3, %v779_v4 }
 0xfa0   :  { %789 = vrot.lane.b32.xlu0 %v787_v5, %s1224_s2 }
0x1012   :  { %v790_v7 = vpop.permute.xlu0 %789 }
0x1013   :  { %v792_v8 = vadd.f32 %v790_v7, %v782_v6 }
0x1015   :  { %1051 = vtanh.f32 %v792_v8 }
0x101b   :  { %v1052_v9 = vpop.eup %1051 }
0x101c   :  { %795 = vrot.lane.b32.xlu1 %v1052_v9, %s1224_s2 }
0x108e   :  { %v796_v12 = vpop.permute.xlu1 %795 }
0x108f   :  { %v798_v13 = vmul.f32 %v796_v12, %v779_v4 }
0x1091   :  { %v799_v14 = vpack.c.bf16 %v798_v13, %v798_v13 }
0x1093   :  { %801 = vrot.lane.b32.xlu2 %v799_v14, %s1215_s1 }
0x10ed   :  { %v802_v15 = vpop.permute.xlu2 %801 }
0x10ee   :  { %946 = vmatmul.msk.bf16.vlgmr.msra.gmra.mxu2 %vm396_vm12, %v802_v15 }
0x1171   :  { %v815_v18 = vpop.f32.mrf.mxu2 }
0x1172   :  { %v819_v19 = vadd.f32 %v815_v18, %v378_v17 }
0x1174   :  { %1053 = vtanh.f32 %v819_v19  ;;  %v947_v23 = vmul.f32 -1.442695, %v819_v19 }
0x1176   :  { %1055 = vpow2.f32 %v947_v23 }
0x1179   :  { %v817_v11 = vpop.f32.mrf.mxu2 }
0x117a   :  { %v1054_v20 = vpop.eup %1053 }
0x117b   :  { %842 = vrot.lane.b32.xlu0 %v1054_v20, %s1224_s2 }
0x117c   :  { %v1056_v24 = vpop.eup %1055 }
0x117d   :  { %v823_v25 = vadd.f32 1.0, %v1056_v24 }
0x117f   :  { %1057 = vrcp.f32 %v823_v25  ;;  %v835_v31 = vand.u32 2147483648, %v823_v25  ;;  %vm829_vm13 = vweird.f32 %v823_v25  ;;  %v833_v56 = vand.u32 2147483647, %v823_v25 }
0x1181   :  { %v836_v21 = vor.u32 1.1754944e-38, %v835_v31  ;;  %vm834_vm15 = vcmp.eq.f32.partialorder %v833_v56, 8.507059e+37 }
0x1185   :  { %v1058_v26 = vpop.eup %1057 }
0x1186   :  { %v825_v27 = vmul.f32 %v1058_v26, %v823_v25  ;;  %vm830_vm11 = vweird.f32 %v1058_v26 }
0x1187   :  { %vm831_vm14 = vmor %vm829_vm13, %vm830_vm11 }
0x1188   :  { %v826_v28 = vsub.f32 1.0, %v825_v27 }
0x118a   :  { %v827_v29 = vmul.f32 %v1058_v26, %v826_v28 }
0x118c   :  { %v828_v30 = vadd.f32 %v1058_v26, %v827_v29 }
0x118e   :  { %v832_v32 = vsel %vm831_vm14, %v1058_v26, %v828_v30 }
0x118f   :  { %v837_v34 = vsel %vm834_vm15, %v836_v21, %v832_v32 }
0x1190   :  { %v840_v36 = vmul.f32 %v837_v34, %v792_v8 }
0x11ed   :  { %v843_v33 = vpop.permute.xlu0 %842 }
0x11ee   :  { %v845_v35 = vmul.f32 %v843_v33, %v837_v34 }
0x11f0   :  { %847 = vrot.lane.b32.xlu1 %v845_v35, %s1224_s2 }
0x1262   :  { %v848_v37 = vpop.permute.xlu1 %847 }
0x1263   :  { %v850_v38 = vadd.f32 %v848_v37, %v840_v36 }
0x1265   :  { %1059 = vtanh.f32 %v850_v38 }
0x126b   :  { %v1060_v39 = vpop.eup %1059 }
0x126c   :  { %853 = vrot.lane.b32.xlu2 %v1060_v39, %s1224_s2 }
0x12c6   :  { %v854_v10 = vpop.permute.xlu2 %853 }
0x12c7   :  { %v856_v42 = vmul.f32 %v854_v10, %v837_v34 }
0x12c9   :  { %v857_v43 = vpack.c.bf16 %v856_v42, %v856_v42 }
0x12cb   :  { %867 = vrot.lane.b32.xlu0 %v857_v43, %s1215_s1 }
0x133d   :  { %v868_v22 = vpop.permute.xlu0 %867 }
0x133e   :  { %956 = vmatmul.msk.bf16.vlgmr.msra.gmra.mxu3 %vm396_vm12, %v868_v22 }
0x13c1   :  { %v893_v46 = vpop.f32.mrf.mxu3 }
0x13c2   :  { %v894_v47 = vadd.f32 %v978_v45, %v893_v46 }
0x13c4   :  { %897 = vst [vmem:[#allocation11] sm:$0xff] %v894_v47 }
0x13c5   :  { %908 = dma.vmem_to_hbm [thread:$0]  %s904_s13, 128, %s906_s16, [#allocation4]  }
0x13c9   :  { %v895_v48 = vpop.f32.mrf.mxu3 }
0x13ca   :  { %1211 = dma.done.wait [#allocation4], 128  }
0x13cb   :  { %1212 = vsyncadd [#allocation4], 4294967168 }
0x13cc   :  { %913 = vsyncpa [#allocation3], 1 }
0x13cd   :  { %914 = vsyncpa [#allocation6], 1 }
0x13ce   :  { %915 = vsyncpa [#allocation9], 1 }
0x13cf   :  { %916 = vsyncpa [#allocation4], 1 }

</bundles_post_ra>
